<compile_context>
chip_gen: v7x
topology: tpu7x:2x2x1
jax: 0.10.0
libtpu: 0.0.40
codegen_flags: <defaults>
</compile_context>

<pallas_src>
import functools

import jax
import jax.numpy as jnp
from jax.experimental import pallas as pl
from jax.experimental.pallas import tpu as pltpu

IN_PAD = 128    # N*(state_dim+action_dim) padded to one full lane tile
H1_PAD = 512    # 400 -> 512
H2_PAD = 384    # 300 -> 384


def _round_up(n, m):
    return (n + m - 1) // m * m


def _critic_kernel(x_ref,
                   wA_ref, bA_ref,          # fused layer1||layer4
                   w2_ref, b2_ref,          # layer2 (padded)
                   w5_ref, b5_ref,          # layer5 (padded)
                   w3_ref, b3_ref,          # layer3 as (1, H2_PAD) row + scalar bias
                   w6_ref, b6_ref,          # layer6 as (1, H2_PAD) row + scalar bias
                   q_ref, *, pad_lanes, h1_dim):
    # In-kernel zero-extension of the feature axis to a full 128-lane tile + bf16 cast
    # (replaces the wrapper-side 6.4x-inflated padded bf16 copy of x through HBM).
    x = x_ref[...]                                            # (TILE_B, in_dim) f32
    if pad_lanes > 0:
        zeros = jnp.zeros((x.shape[0], pad_lanes), jnp.float32)
        x = jnp.concatenate([x, zeros], axis=-1)              # (TILE_B, IN_PAD) f32
    xb = x.astype(jnp.bfloat16)

    # Fused first layer of both heads: one wide MXU matmul, f32 accumulation, f32 bias/ReLU.
    h = jnp.dot(xb, wA_ref[...], preferred_element_type=jnp.float32) + bA_ref[...]
    h = jnp.maximum(h, 0.0)                                   # (TILE_B, 2*H1_PAD) f32

    h1 = h[:, :h1_dim].astype(jnp.bfloat16)                   # head-1 activations
    h2 = h[:, h1_dim:].astype(jnp.bfloat16)                   # head-2 activations

    # Second layers (separate inputs -> separate matmuls), f32 accumulation.
    a1 = jnp.dot(h1, w2_ref[...], preferred_element_type=jnp.float32) + b2_ref[...]
    a1 = jnp.maximum(a1, 0.0)                                 # (TILE_B, H2_PAD) f32
    a2 = jnp.dot(h2, w5_ref[...], preferred_element_type=jnp.float32) + b5_ref[...]
    a2 = jnp.maximum(a2, 0.0)

    # Final 300->1 layers on VPU (elementwise mul) + XLU (lane reduce) instead of a
    # 1-column MXU matmul. Padded columns of a1/a2 and w3/w6 rows are zero -> inert.
    q1 = jnp.sum(a1 * w3_ref[...], axis=-1, keepdims=True) + b3_ref[...]
    q2 = jnp.sum(a2 * w6_ref[...], axis=-1, keepdims=True) + b6_ref[...]

    # Direct width-1 lane-slice stores; no concatenate/relayout before the store.
    q_ref[:, 0:1] = q1.astype(q_ref.dtype)
    q_ref[:, 1:2] = q2.astype(q_ref.dtype)


@functools.partial(jax.jit, static_argnames=("tile_b",))
def critic_forward(x, packed, tile_b=1024):
    """Pallas implementation of Critic.forward: returns (q1, q2), each (B, 1) float32."""
    B, in_dim = x.shape
    wA, bA, w2, b2, w5, b5, w3r, b3, w6r, b6 = packed

    in_pad, h1x2 = wA.shape
    h1_pad = h1x2 // 2
    h2_pad = w2.shape[1]
    if in_dim > in_pad:
        raise ValueError("input feature dim exceeds packed weight padding")

    # Batch tiling: round rows to 16, cap the tile at tile_b, split into >= 2 balanced tiles
    # for large batches so both v7x TensorCores get work.
    b_pad = max(_round_up(B, 16), 16)
    tb0 = min(tile_b, b_pad)
    n_tiles = -(-b_pad // tb0)          # cdiv
    if n_tiles == 1 and b_pad >= 512:
        n_tiles = 2
    tb = _round_up(-(-b_pad // n_tiles), 16)
    b_pad = tb * n_tiles

    if b_pad != B:                       # tiny row pad only (in_dim f32 cols, no lane pad/cast)
        x = jnp.pad(x, ((0, b_pad - B), (0, 0)))

    const = lambda i: (0, 0)   # weights: DMA'd once, VMEM-resident across batch tiles
    q = pl.pallas_call(
        functools.partial(_critic_kernel, pad_lanes=in_pad - in_dim, h1_dim=h1_pad),
        out_shape=jax.ShapeDtypeStruct((b_pad, 2), jnp.float32),
        grid=(n_tiles,),
        in_specs=[
            pl.BlockSpec((tb, in_dim), lambda i: (i, 0)),       # x tile: raw f32, full last dim
            pl.BlockSpec((in_pad, 2 * h1_pad), const),          # wA  (bf16)
            pl.BlockSpec((1, 2 * h1_pad), const),               # bA  (f32)
            pl.BlockSpec((h1_pad, h2_pad), const),              # w2  (bf16)
            pl.BlockSpec((1, h2_pad), const),                   # b2  (f32)
            pl.BlockSpec((h1_pad, h2_pad), const),              # w5  (bf16)
            pl.BlockSpec((1, h2_pad), const),                   # b5  (f32)
            pl.BlockSpec((1, h2_pad), const),                   # w3 row (f32)
            pl.BlockSpec((1, 1), const),                        # b3
            pl.BlockSpec((1, h2_pad), const),                   # w6 row (f32)
            pl.BlockSpec((1, 1), const),                        # b6
        ],
        out_specs=pl.BlockSpec((tb, 2), lambda i: (i, 0)),
        compiler_params=pltpu.CompilerParams(
            dimension_semantics=("parallel",),   # independent batch tiles
            vmem_limit_bytes=48 * 1024 * 1024,   # headroom for tile_b up to ~2048; < 64 MiB (v7x)
        ),
    )(x, wA, bA, w2, b2, w5, b5, w3r, b3, w6r, b6)

    return q[:B, 0:1], q[:B, 1:2]


def init_critic_params(key, state_dim, action_dim, N):
    """Deterministic init mimicking nn.Linear's default U(-1/sqrt(fan_in), 1/sqrt(fan_in)).

    Weights stored as (in_features, out_features); biases as (1, out_features).
    """
    in_dim = N * (state_dim + action_dim)
    dims = [(in_dim, 400), (400, 300), (300, 1),   # head 1: layer1..layer3
            (in_dim, 400), (400, 300), (300, 1)]   # head 2: layer4..layer6
    params = []
    for (fan_in, fan_out) in dims:
        key, kw, kb = jax.random.split(key, 3)
        bound = 1.0 / jnp.sqrt(jnp.float32(fan_in))
        w = jax.random.uniform(kw, (fan_in, fan_out), jnp.float32, -bound, bound)
        b = jax.random.uniform(kb, (1, fan_out), jnp.float32, -bound, bound)
        params.extend([w, b])
    return tuple(params)


def pack_critic_params(params):
    """One-time packing: pad to 128-multiples, fuse layer1||layer4, cast matmul weights to bf16."""
    w1, b1, w2, b2, w3, b3, w4, b4, w5, b5, w6, b6 = params
    in_dim = w1.shape[0]
    ipad = max(IN_PAD, _round_up(in_dim, 128))

    def pad2(a, rows, cols):
        out = jnp.zeros((rows, cols), jnp.float32)
        return out.at[:a.shape[0], :a.shape[1]].set(a.astype(jnp.float32))

    wA = jnp.concatenate([pad2(w1, ipad, H1_PAD), pad2(w4, ipad, H1_PAD)],
                         axis=1).astype(jnp.bfloat16)                         # (128, 1024)
    bA = jnp.concatenate([pad2(b1, 1, H1_PAD), pad2(b4, 1, H1_PAD)], axis=1)  # (1, 1024) f32

    w2p = pad2(w2, H1_PAD, H2_PAD).astype(jnp.bfloat16)
    b2p = pad2(b2, 1, H2_PAD)
    w5p = pad2(w5, H1_PAD, H2_PAD).astype(jnp.bfloat16)
    b5p = pad2(b5, 1, H2_PAD)

    w3r = pad2(w3.T, 1, H2_PAD)                     # kept f32: used on the VPU/XLU path
    w6r = pad2(w6.T, 1, H2_PAD)
    b3p = b3.reshape(1, 1).astype(jnp.float32)
    b6p = b6.reshape(1, 1).astype(jnp.float32)

    return (wA, bA, w2p, b2p, w5p, b5p, w3r, b3p, w6r, b6p)


def _reference_forward_f32(x, params):
    """Plain-JAX f32 reference (semantics of the PyTorch module)."""
    w1, b1, w2, b2, w3, b3, w4, b4, w5, b5, w6, b6 = params
    h1 = jnp.maximum(x @ w1 + b1, 0.0)
    h1 = jnp.maximum(h1 @ w2 + b2, 0.0)
    q1 = h1 @ w3 + b3
    h2 = jnp.maximum(x @ w4 + b4, 0.0)
    h2 = jnp.maximum(h2 @ w5 + b5, 0.0)
    q2 = h2 @ w6 + b6
    return q1, q2


def _reference_forward_bf16(x, params):
    """Reference that mirrors the kernel's bf16-matmul / f32-accumulate arithmetic."""
    w1, b1, w2, b2, w3, b3, w4, b4, w5, b5, w6, b6 = params

    def lin(h, w, b):
        return jnp.dot(h.astype(jnp.bfloat16), w.astype(jnp.bfloat16),
                       preferred_element_type=jnp.float32) + b

    h1 = jnp.maximum(lin(x, w1, b1), 0.0)
    h1 = jnp.maximum(lin(h1, w2, b2), 0.0)
    q1 = jnp.sum(h1 * w3[:, 0][None, :], axis=-1, keepdims=True) + b3
    h2 = jnp.maximum(lin(x, w4, b4), 0.0)
    h2 = jnp.maximum(lin(h2, w5, b5), 0.0)
    q2 = jnp.sum(h2 * w6[:, 0][None, :], axis=-1, keepdims=True) + b6
    return q1, q2


def _check(x, params, packed, tile_b):
    q1, q2 = critic_forward(x, packed, tile_b=tile_b)
    q1 = jax.block_until_ready(q1)
    q2 = jax.block_until_ready(q2)
    assert q1.shape == (x.shape[0], 1) and q2.shape == (x.shape[0], 1)

    # Tight check vs. a bf16-matched reference (same arithmetic as the kernel).
    r1b, r2b = _reference_forward_bf16(x, params)
    assert jnp.allclose(q1, r1b, atol=2e-3, rtol=2e-3)
    assert jnp.allclose(q2, r2b, atol=2e-3, rtol=2e-3)

    # Loose sanity check vs. the pure-f32 PyTorch-semantics reference.
    r1, r2 = _reference_forward_f32(x, params)
    assert jnp.allclose(q1, r1, atol=5e-2, rtol=5e-2)
    assert jnp.allclose(q2, r2, atol=5e-2, rtol=5e-2)


if __name__ == "__main__":
    # Small shapes consistent with the module: N agents, each with state+action.
    state_dim, action_dim, N = 8, 2, 2
    in_dim = N * (state_dim + action_dim)  # 20

    key = jax.random.PRNGKey(0)
    key, kx1, kx2 = jax.random.split(key, 3)

    params = init_critic_params(key, state_dim, action_dim, N)
    packed = pack_critic_params(params)          # one-time weight packing (like model loading)

    # 1) Small batch, single tile.
    x_small = jax.random.normal(kx1, (4, in_dim), jnp.float32)
    _check(x_small, params, packed, tile_b=1024)

    # 2) Non-aligned batch with a small tile override -> exercises the multi-tile (grid > 1)
    #    path and the padded/discarded trailing rows.
    x_multi = jax.random.normal(kx2, (100, in_dim), jnp.float32)
    _check(x_multi, params, packed, tile_b=64)

    print("KERNEL_OK")
</pallas_src>

<mosaic_0001>
module attributes {stable_mosaic.version = 11 : i64} {
  func.func @_critic_kernel(%arg0: i32, %arg1: memref<16x20xf32, #tpu.memory_space<vmem>>, %arg2: memref<128x1024xbf16, #tpu.memory_space<vmem>>, %arg3: memref<1x1024xf32, #tpu.memory_space<vmem>>, %arg4: memref<512x384xbf16, #tpu.memory_space<vmem>>, %arg5: memref<1x384xf32, #tpu.memory_space<vmem>>, %arg6: memref<512x384xbf16, #tpu.memory_space<vmem>>, %arg7: memref<1x384xf32, #tpu.memory_space<vmem>>, %arg8: memref<1x384xf32, #tpu.memory_space<vmem>>, %arg9: memref<1x1xf32, #tpu.memory_space<vmem>>, %arg10: memref<1x384xf32, #tpu.memory_space<vmem>>, %arg11: memref<1x1xf32, #tpu.memory_space<vmem>>, %arg12: memref<16x2xf32, #tpu.memory_space<vmem>>) attributes {dimension_semantics = [#tpu.dimension_semantics<parallel>], iteration_bounds = array<i64: 1>, scalar_prefetch = 0 : i64, scratch_operands = 0 : i64, tpu.core_type = #tpu.core_type<tc>, window_params = [{transform_indices = @transform_0, window_bounds = array<i64: 16, 20>}, {pipeline_mode = #tpu.pipeline_mode<synchronous>, transform_indices = @transform_1, window_bounds = array<i64: 128, 1024>}, {pipeline_mode = #tpu.pipeline_mode<synchronous>, transform_indices = @transform_2, window_bounds = array<i64: 1, 1024>}, {pipeline_mode = #tpu.pipeline_mode<synchronous>, transform_indices = @transform_3, window_bounds = array<i64: 512, 384>}, {pipeline_mode = #tpu.pipeline_mode<synchronous>, transform_indices = @transform_4, window_bounds = array<i64: 1, 384>}, {pipeline_mode = #tpu.pipeline_mode<synchronous>, transform_indices = @transform_5, window_bounds = array<i64: 512, 384>}, {pipeline_mode = #tpu.pipeline_mode<synchronous>, transform_indices = @transform_6, window_bounds = array<i64: 1, 384>}, {pipeline_mode = #tpu.pipeline_mode<synchronous>, transform_indices = @transform_7, window_bounds = array<i64: 1, 384>}, {pipeline_mode = #tpu.pipeline_mode<synchronous>, transform_indices = @transform_8, window_bounds = array<i64: 1, 1>}, {pipeline_mode = #tpu.pipeline_mode<synchronous>, transform_indices = @transform_9, window_bounds = array<i64: 1, 384>}, {pipeline_mode = #tpu.pipeline_mode<synchronous>, transform_indices = @transform_10, window_bounds = array<i64: 1, 1>}, {transform_indices = @transform_11, window_bounds = array<i64: 16, 2>}]} {
    %c0 = arith.constant 0 : index
    %c0_0 = arith.constant 0 : index
    %0 = vector.load %arg1[%c0, %c0_0] : memref<16x20xf32, #tpu.memory_space<vmem>>, vector<16x20xf32>
    %cst = arith.constant 0.000000e+00 : f32
    %1 = vector.broadcast %cst : f32 to vector<16x108xf32>
    %2 = tpu.concatenate %0, %1 in 1 : vector<16x20xf32>, vector<16x108xf32> -> vector<16x128xf32>
    %3 = arith.truncf %2 : vector<16x128xf32> to vector<16x128xbf16>
    %c0_1 = arith.constant 0 : index
    %c0_2 = arith.constant 0 : index
    %4 = vector.load %arg2[%c0_1, %c0_2] : memref<128x1024xbf16, #tpu.memory_space<vmem>>, vector<128x1024xbf16>
    %cst_3 = arith.constant dense<0.000000e+00> : vector<16x1024xf32>
    %5 = tpu.matmul %3, %4, %cst_3 {dimension_numbers = #tpu.dot_dimension_numbers<[1], [0], [0], [1], [0, 0, 1, 1], [], []>} : vector<16x128xbf16>, vector<128x1024xbf16>, vector<16x1024xf32> -> vector<16x1024xf32>
    %c0_4 = arith.constant 0 : index
    %c0_5 = arith.constant 0 : index
    %6 = vector.load %arg3[%c0_4, %c0_5] : memref<1x1024xf32, #tpu.memory_space<vmem>>, vector<1x1024xf32>
    %7 = vector.broadcast %6 : vector<1x1024xf32> to vector<16x1024xf32>
    %8 = arith.addf %5, %7 : vector<16x1024xf32>
    %cst_6 = arith.constant 0.000000e+00 : f32
    %9 = vector.broadcast %cst_6 : f32 to vector<16x1024xf32>
    %10 = arith.maximumf %8, %9 : vector<16x1024xf32>
    %11 = vector.extract_strided_slice %10 {offsets = [0, 0], sizes = [16, 512], strides = [1, 1]} : vector<16x1024xf32> to vector<16x512xf32>
    %12 = arith.truncf %11 : vector<16x512xf32> to vector<16x512xbf16>
    %13 = vector.extract_strided_slice %10 {offsets = [0, 512], sizes = [16, 512], strides = [1, 1]} : vector<16x1024xf32> to vector<16x512xf32>
    %14 = arith.truncf %13 : vector<16x512xf32> to vector<16x512xbf16>
    %c0_7 = arith.constant 0 : index
    %c0_8 = arith.constant 0 : index
    %15 = vector.load %arg4[%c0_7, %c0_8] : memref<512x384xbf16, #tpu.memory_space<vmem>>, vector<512x384xbf16>
    %cst_9 = arith.constant dense<0.000000e+00> : vector<16x384xf32>
    %16 = tpu.matmul %12, %15, %cst_9 {dimension_numbers = #tpu.dot_dimension_numbers<[1], [0], [0], [1], [0, 0, 1, 1], [], []>} : vector<16x512xbf16>, vector<512x384xbf16>, vector<16x384xf32> -> vector<16x384xf32>
    %c0_10 = arith.constant 0 : index
    %c0_11 = arith.constant 0 : index
    %17 = vector.load %arg5[%c0_10, %c0_11] : memref<1x384xf32, #tpu.memory_space<vmem>>, vector<1x384xf32>
    %18 = vector.broadcast %17 : vector<1x384xf32> to vector<16x384xf32>
    %19 = arith.addf %16, %18 : vector<16x384xf32>
    %cst_12 = arith.constant 0.000000e+00 : f32
    %20 = vector.broadcast %cst_12 : f32 to vector<16x384xf32>
    %21 = arith.maximumf %19, %20 : vector<16x384xf32>
    %c0_13 = arith.constant 0 : index
    %c0_14 = arith.constant 0 : index
    %22 = vector.load %arg6[%c0_13, %c0_14] : memref<512x384xbf16, #tpu.memory_space<vmem>>, vector<512x384xbf16>
    %cst_15 = arith.constant dense<0.000000e+00> : vector<16x384xf32>
    %23 = tpu.matmul %14, %22, %cst_15 {dimension_numbers = #tpu.dot_dimension_numbers<[1], [0], [0], [1], [0, 0, 1, 1], [], []>} : vector<16x512xbf16>, vector<512x384xbf16>, vector<16x384xf32> -> vector<16x384xf32>
    %c0_16 = arith.constant 0 : index
    %c0_17 = arith.constant 0 : index
    %24 = vector.load %arg7[%c0_16, %c0_17] : memref<1x384xf32, #tpu.memory_space<vmem>>, vector<1x384xf32>
    %25 = vector.broadcast %24 : vector<1x384xf32> to vector<16x384xf32>
    %26 = arith.addf %23, %25 : vector<16x384xf32>
    %cst_18 = arith.constant 0.000000e+00 : f32
    %27 = vector.broadcast %cst_18 : f32 to vector<16x384xf32>
    %28 = arith.maximumf %26, %27 : vector<16x384xf32>
    %c0_19 = arith.constant 0 : index
    %c0_20 = arith.constant 0 : index
    %29 = vector.load %arg8[%c0_19, %c0_20] : memref<1x384xf32, #tpu.memory_space<vmem>>, vector<1x384xf32>
    %30 = vector.broadcast %29 : vector<1x384xf32> to vector<16x384xf32>
    %31 = arith.mulf %21, %30 : vector<16x384xf32>
    %cst_21 = arith.constant dense<0.000000e+00> : vector<16xf32>
    %32 = vector.multi_reduction <add>, %31, %cst_21 [1] : vector<16x384xf32> to vector<16xf32>
    %33 = vector.shape_cast %32 : vector<16xf32> to vector<16x1xf32>
    %c0_22 = arith.constant 0 : index
    %c0_23 = arith.constant 0 : index
    %34 = vector.load %arg9[%c0_22, %c0_23] : memref<1x1xf32, #tpu.memory_space<vmem>>, vector<1x1xf32>
    %35 = vector.broadcast %34 : vector<1x1xf32> to vector<16x1xf32>
    %36 = arith.addf %33, %35 : vector<16x1xf32>
    %c0_24 = arith.constant 0 : index
    %c0_25 = arith.constant 0 : index
    %37 = vector.load %arg10[%c0_24, %c0_25] : memref<1x384xf32, #tpu.memory_space<vmem>>, vector<1x384xf32>
    %38 = vector.broadcast %37 : vector<1x384xf32> to vector<16x384xf32>
    %39 = arith.mulf %28, %38 : vector<16x384xf32>
    %cst_26 = arith.constant dense<0.000000e+00> : vector<16xf32>
    %40 = vector.multi_reduction <add>, %39, %cst_26 [1] : vector<16x384xf32> to vector<16xf32>
    %41 = vector.shape_cast %40 : vector<16xf32> to vector<16x1xf32>
    %c0_27 = arith.constant 0 : index
    %c0_28 = arith.constant 0 : index
    %42 = vector.load %arg11[%c0_27, %c0_28] : memref<1x1xf32, #tpu.memory_space<vmem>>, vector<1x1xf32>
    %43 = vector.broadcast %42 : vector<1x1xf32> to vector<16x1xf32>
    %44 = arith.addf %41, %43 : vector<16x1xf32>
    %c0_29 = arith.constant 0 : index
    %c0_30 = arith.constant 0 : index
    %45 = vector.load %arg12[%c0_29, %c0_30] : memref<16x2xf32, #tpu.memory_space<vmem>>, vector<16x1xf32>
    tpu.vector_store %arg12[%c0_29, %c0_30], %36 {strides = array<i32>} : memref<16x2xf32, #tpu.memory_space<vmem>>, vector<16x1xf32>,
    %c0_31 = arith.constant 0 : index
    %c1 = arith.constant 1 : index
    %46 = vector.load %arg12[%c0_31, %c1] : memref<16x2xf32, #tpu.memory_space<vmem>>, vector<16x1xf32>
    tpu.vector_store %arg12[%c0_31, %c1], %44 {strides = array<i32>} : memref<16x2xf32, #tpu.memory_space<vmem>>, vector<16x1xf32>,
    return
  }
  func.func @transform_0(%arg0: i32) -> (i32, i32) {
    %c0_i32 = arith.constant 0 : i32
    %c0_i32_0 = arith.constant 0 : i32
    return %arg0, %c0_i32 : i32, i32
  }
  func.func @transform_1(%arg0: i32) -> (i32, i32) {
    %c0_i32 = arith.constant 0 : i32
    %c0_i32_0 = arith.constant 0 : i32
    %c0_i32_1 = arith.constant 0 : i32
    return %c0_i32, %c0_i32_0 : i32, i32
  }
  func.func @transform_2(%arg0: i32) -> (i32, i32) {
    %c0_i32 = arith.constant 0 : i32
    %c0_i32_0 = arith.constant 0 : i32
    %c0_i32_1 = arith.constant 0 : i32
    return %c0_i32, %c0_i32_0 : i32, i32
  }
  func.func @transform_3(%arg0: i32) -> (i32, i32) {
    %c0_i32 = arith.constant 0 : i32
    %c0_i32_0 = arith.constant 0 : i32
    %c0_i32_1 = arith.constant 0 : i32
    return %c0_i32, %c0_i32_0 : i32, i32
  }
  func.func @transform_4(%arg0: i32) -> (i32, i32) {
    %c0_i32 = arith.constant 0 : i32
    %c0_i32_0 = arith.constant 0 : i32
    %c0_i32_1 = arith.constant 0 : i32
    return %c0_i32, %c0_i32_0 : i32, i32
  }
  func.func @transform_5(%arg0: i32) -> (i32, i32) {
    %c0_i32 = arith.constant 0 : i32
    %c0_i32_0 = arith.constant 0 : i32
    %c0_i32_1 = arith.constant 0 : i32
    return %c0_i32, %c0_i32_0 : i32, i32
  }
  func.func @transform_6(%arg0: i32) -> (i32, i32) {
    %c0_i32 = arith.constant 0 : i32
    %c0_i32_0 = arith.constant 0 : i32
    %c0_i32_1 = arith.constant 0 : i32
    return %c0_i32, %c0_i32_0 : i32, i32
  }
  func.func @transform_7(%arg0: i32) -> (i32, i32) {
    %c0_i32 = arith.constant 0 : i32
    %c0_i32_0 = arith.constant 0 : i32
    %c0_i32_1 = arith.constant 0 : i32
    return %c0_i32, %c0_i32_0 : i32, i32
  }
  func.func @transform_8(%arg0: i32) -> (i32, i32) {
    %c0_i32 = arith.constant 0 : i32
    %c0_i32_0 = arith.constant 0 : i32
    %c0_i32_1 = arith.constant 0 : i32
    return %c0_i32, %c0_i32_0 : i32, i32
  }
  func.func @transform_9(%arg0: i32) -> (i32, i32) {
    %c0_i32 = arith.constant 0 : i32
    %c0_i32_0 = arith.constant 0 : i32
    %c0_i32_1 = arith.constant 0 : i32
    return %c0_i32, %c0_i32_0 : i32, i32
  }
  func.func @transform_10(%arg0: i32) -> (i32, i32) {
    %c0_i32 = arith.constant 0 : i32
    %c0_i32_0 = arith.constant 0 : i32
    %c0_i32_1 = arith.constant 0 : i32
    return %c0_i32, %c0_i32_0 : i32, i32
  }
  func.func @transform_11(%arg0: i32) -> (i32, i32) {
    %c0_i32 = arith.constant 0 : i32
    %c0_i32_0 = arith.constant 0 : i32
    return %arg0, %c0_i32 : i32, i32
  }
}

</mosaic_0001>

<bundles_post_ra>
// kernel: critic_forward.1
= control target key start
LH: loop header
LB: loop body
LE: loop exit
PB: predicated region body
PF: predicated region fallthrough
CT: control target
= control target key end

     0   :  { %s3416_s0 = inlined_call_operand.vmem [shape: f32[16,20], index: 0, kind: input, shape index: {}]   ;;  %s3417_s1 = inlined_call_operand.hbm [shape: bf16[128,1024], index: 1, kind: input, shape index: {}]   ;;  %s3418_s2 = inlined_call_operand.vmem [shape: f32[1,1024], index: 2, kind: input, shape index: {}]   ;;  %s3419_s3 = inlined_call_operand.hbm [shape: bf16[512,384], index: 3, kind: input, shape index: {}]   ;;  %s3420_s4 = inlined_call_operand.vmem [shape: f32[1,384], index: 4, kind: input, shape index: {}]   ;;  %s3421_s5 = inlined_call_operand.hbm [shape: bf16[512,384], index: 5, kind: input, shape index: {}]   ;;  %s3422_s6 = inlined_call_operand.vmem [shape: f32[1,384], index: 6, kind: input, shape index: {}]   ;;  %s3423_s7 = inlined_call_operand.vmem [shape: f32[1,384], index: 7, kind: input, shape index: {}]   ;;  %s3424_s8 = inlined_call_operand.<no memory space> [shape: f32[1,1], index: 8, kind: input, shape index: {}]   ;;  %s3425_s9 = inlined_call_operand.vmem [shape: f32[1,384], index: 9, kind: input, shape index: {}]   ;;  %s3426_s11 = inlined_call_operand.vmem [shape: f32[16,2], index: 11, kind: output, shape index: {}]   ;;  %s3427_s10 = inlined_call_operand.<no memory space> [shape: f32[1,1], index: 10, kind: input, shape index: {}]  }
   0x1   :  { %v16_v0 = vstv %s3424_s8  ;;  %v18_v1 = vstv %s3427_s10 }
   0x2   :  { %17 = vst [vmem:[#allocation2] sm:$0x1] %v16_v0  ;;  %19 = vst [vmem:[#allocation3] sm:$0x1] %v18_v1 }
   0x3   :  { %20 = vsyncpa [#allocation5], 0 }
   0x4   :  { %21 = vsyncpa [#allocation7], 0  ;;  %s3183_s21 = smov [#allocation6]   ;;  %s3113_s25 = scalar_lea.hbm %s3419_s3, 12288 }
   0x5   :  { %s43_s22 = sshll.u32 %s3183_s21, 4  ;;  %p3114_p0 = scmp.ne.s32.totalorder %s3419_s3, %s3113_s25  ;;  %s44_s22 = int_to_ptr.vmem [resolvable:$true] %s43_s22 }
   0x6   :  { %p3117_p1 = scmp.lt.u32.totalorder %s3113_s25, %s3419_s3 }
   0x8   :  { %p3119_p2 = pnand %p3117_p1, %p3114_p0 }
   0xa   :  { %3122 = shalt.err (!%p3119_p2)
}
   0xb   :  { %s3123_s10 = scalar_lea.vmem %s44_s22, 12288  ;;  %p3128_p4 = scmp.lt.s32.totalorder %s44_s22, %s44_s22 }
   0xc   :  { %p3124_p3 = scmp.ne.s32.totalorder %s44_s22, %s3123_s10  ;;  %p3129_p5 = scmp.lt.s32.totalorder %s3123_s10, %s3123_s10 }
   0xe   :  { %p3130_p6 = por %p3129_p5, %p3128_p4 }
  0x10   :  { %p3131_p7 = pnand %p3130_p6, %p3124_p3 }
  0x12   :  { %3134 = shalt.err (!%p3131_p7)
}
  0x13   :  { %s3184_s29 = smov 192   ;;  %s3185_s30 = smov 12  }
  0x14   :  { %49 = dma.hbm_to_vmem [thread:$0]  %s3419_s3, 12288, %s44_s22, [#allocation7], %s3184_s29, %s3184_s29, %s3185_s30  }
  0x15   :  { %s3186_s14 = smov [#allocation4]   ;;  %s3135_s18 = scalar_lea.hbm %s3417_s1, 8192 }
  0x16   :  { %s29_s15 = sshll.u32 %s3186_s14, 4  ;;  %p3136_p8 = scmp.ne.s32.totalorder %s3417_s1, %s3135_s18  ;;  %s30_s15 = int_to_ptr.vmem [resolvable:$true] %s29_s15 }
  0x17   :  { %p3139_p9 = scmp.lt.u32.totalorder %s3135_s18, %s3417_s1 }
  0x19   :  { %p3141_p10 = pnand %p3139_p9, %p3136_p8 }
  0x1b   :  { %3144 = shalt.err (!%p3141_p10)
}
  0x1c   :  { %s3145_s24 = scalar_lea.vmem %s30_s15, 8192  ;;  %p3150_p12 = scmp.lt.s32.totalorder %s30_s15, %s30_s15 }
  0x1d   :  { %p3146_p11 = scmp.ne.s32.totalorder %s30_s15, %s3145_s24  ;;  %p3151_p13 = scmp.lt.s32.totalorder %s3145_s24, %s3145_s24 }
  0x1f   :  { %p3152_p0 = por %p3151_p13, %p3150_p12 }
  0x21   :  { %p3153_p1 = pnand %p3152_p0, %p3146_p11 }
  0x23   :  { %3156 = shalt.err (!%p3153_p1)
}
  0x24   :  { %s3187_s3 = smov 512   ;;  %s3188_s22 = smov 32  }
  0x25   :  { %35 = dma.hbm_to_vmem [thread:$0]  %s3417_s1, 8192, %s30_s15, [#allocation5], %s3187_s3, %s3187_s3, %s3188_s22  }
  0x26   :  { %s3189_s27 = smov [#allocation8]   ;;  %s3157_s12 = scalar_lea.hbm %s3421_s5, 12288 }
  0x27   :  { %s57_s8 = sshll.u32 %s3189_s27, 4  ;;  %p3158_p2 = scmp.ne.s32.totalorder %s3421_s5, %s3157_s12  ;;  %s58_s8 = int_to_ptr.vmem [resolvable:$true] %s57_s8 }
  0x28   :  { %p3161_p3 = scmp.lt.u32.totalorder %s3157_s12, %s3421_s5 }
  0x2a   :  { %p3163_p4 = pnand %p3161_p3, %p3158_p2 }
  0x2c   :  { %3166 = shalt.err (!%p3163_p4)
}
  0x2d   :  { %s3167_s18 = scalar_lea.vmem %s58_s8, 12288  ;;  %p3172_p6 = scmp.lt.s32.totalorder %s58_s8, %s58_s8 }
  0x2e   :  { %p3168_p5 = scmp.ne.s32.totalorder %s58_s8, %s3167_s18  ;;  %p3173_p7 = scmp.lt.s32.totalorder %s3167_s18, %s3167_s18 }
  0x30   :  { %p3174_p8 = por %p3173_p7, %p3172_p6 }
  0x32   :  { %p3175_p9 = pnand %p3174_p8, %p3168_p5 }
  0x34   :  { %3178 = shalt.err (!%p3175_p9)
}
  0x35   :  { %63 = dma.hbm_to_vmem [thread:$0]  %s3421_s5, 12288, %s58_s8, [#allocation7], %s3184_s29, %s3184_s29, %s3185_s30  }
  0x36   :  { %3179 = dma.done.wait [#allocation5], 8192  }
  0x37   :  { %3180 = vsyncadd [#allocation5], 4294959104 }
  0x38   :  { %3181 = dma.done.wait [#allocation7], 24576  }
  0x39   :  { %3182 = vsyncadd [#allocation7], 4294942720  ;;  %v3190_v2 = vmov 0   ;;  %v90_v3 = vld [vmem:[#allocation4] sm:$0xff]  ;;  %v91_v14 = vld [vmem:[#allocation4 + $0x8] sm:$0xff]  ;;  %vm86_vm0 = vcmask 162816  }
  0x3a   :  { %548 = vmatprep.mubr.bf16.mxu0 %v3190_v2  ;;  %591 = vmatprep.mubr.bf16.mxu1 %v3190_v2  ;;  %v94_v4 = vld [vmem:[#allocation4 + $0x20] sm:$0xff]  ;;  %v95_v15 = vld [vmem:[#allocation4 + $0x28] sm:$0xff]  ;;  %v92_v61 = vld [vmem:[#allocation4 + $0x10] sm:$0xff]  ;;  %vm2454_vm2 = vcmask 7168   ;;  %s3191_s27 = smov 1   ;;  %vm2465_vm3 = vcmask 15368  }
  0x3b   :  { %v98_v5 = vld [vmem:[#allocation4 + $0x40] sm:$0xff]  ;;  %v2475_v6 = vcombine.high %v90_v3, %v94_v4  ;;  %v2474_v7 = vcombine.low %v90_v3, %v94_v4  ;;  %v2477_v18 = vcombine.high %v91_v14, %v95_v15  ;;  %v2476_v19 = vcombine.low %v91_v14, %v95_v15  ;;  %v99_v20 = vld [vmem:[#allocation4 + $0x48] sm:$0xff]  ;;  %v96_v63 = vld [vmem:[#allocation4 + $0x30] sm:$0xff] }
  0x3c   :  { %v102_v8 = vld [vmem:[#allocation4 + $0x60] sm:$0xff]  ;;  %v103_v21 = vld [vmem:[#allocation4 + $0x68] sm:$0xff]  ;;  %vm3310_vm1 = vmpackc.low %vm86_vm0, %vm86_vm0  ;;  %v2478_v14 = vcombine.low %v92_v61, %v96_v63 }
  0x3d   :  { %v2483_v9 = vcombine.high %v98_v5, %v102_v8  ;;  %v106_v10 = vld [vmem:[#allocation4 + $0x80] sm:$0xff]  ;;  %516 = vmatprep.subr.bf16.mxu0 %v2475_v6  ;;  %v2482_v12 = vcombine.low %v98_v5, %v102_v8  ;;  %v107_v22 = vld [vmem:[#allocation4 + $0x88] sm:$0xff]  ;;  %559 = vmatprep.subr.bf16.mxu1 %v2477_v18  ;;  %v2485_v25 = vcombine.high %v99_v20, %v103_v21  ;;  %v104_v8 = vld [vmem:[#allocation4 + $0x70] sm:$0xff] }
  0x3e   :  { %v110_v11 = vld [vmem:[#allocation4 + $0xa0] sm:$0xff]  ;;  %517 = vmatpush1.bf16.msra.mxu0 %v2474_v7  ;;  %v111_v23 = vld [vmem:[#allocation4 + $0xa8] sm:$0xff]  ;;  %560 = vmatpush1.bf16.msra.mxu1 %v2476_v19  ;;  %v2484_v27 = vcombine.low %v99_v20, %v103_v21  ;;  %v2479_v6 = vcombine.high %v92_v61, %v96_v63  ;;  %v100_v7 = vld [vmem:[#allocation4 + $0x50] sm:$0xff] }
  0x3f   :  { %518 = vmatprep.subr.bf16.mxu0 %v2483_v9  ;;  %v2491_v13 = vcombine.high %v106_v10, %v110_v11  ;;  %v114_v16 = vld [vmem:[#allocation4 + $0xc0] sm:$0xff]  ;;  %v2490_v24 = vcombine.low %v106_v10, %v110_v11  ;;  %561 = vmatprep.subr.bf16.mxu1 %v2485_v25  ;;  %v2493_v30 = vcombine.high %v107_v22, %v111_v23  ;;  %v115_v31 = vld [vmem:[#allocation4 + $0xc8] sm:$0xff]  ;;  %v93_v10 = vld [vmem:[#allocation4 + $0x18] sm:$0xff] }
  0x40   :  { %v118_v17 = vld [vmem:[#allocation4 + $0xe0] sm:$0xff]  ;;  %v119_v32 = vld [vmem:[#allocation4 + $0xe8] sm:$0xff]  ;;  %v2492_v35 = vcombine.low %v107_v22, %v111_v23  ;;  %v112_v18 = vld [vmem:[#allocation4 + $0xb0] sm:$0xff]  ;;  %v2486_v22 = vcombine.low %v100_v7, %v104_v8 }
  0x41   :  { %v2499_v26 = vcombine.high %v114_v16, %v118_v17  ;;  %v122_v28 = vld [vmem:[#allocation4 + $0x100] sm:$0xff]  ;;  %v2498_v33 = vcombine.low %v114_v16, %v118_v17  ;;  %v2501_v38 = vcombine.high %v115_v31, %v119_v32  ;;  %v123_v39 = vld [vmem:[#allocation4 + $0x108] sm:$0xff]  ;;  %v2500_v43 = vcombine.low %v115_v31, %v119_v32  ;;  %v108_v17 = vld [vmem:[#allocation4 + $0x90] sm:$0xff] }
  0x42   :  { %519 = vmatpush1.bf16.msra.mxu0 %v2482_v12  ;;  %v126_v29 = vld [vmem:[#allocation4 + $0x120] sm:$0xff]  ;;  %562 = vmatpush1.bf16.msra.mxu1 %v2484_v27  ;;  %v127_v40 = vld [vmem:[#allocation4 + $0x128] sm:$0xff]  ;;  %v97_v12 = vld [vmem:[#allocation4 + $0x38] sm:$0xff]  ;;  %v2487_v16 = vcombine.high %v100_v7, %v104_v8 }
  0x43   :  { %520 = vmatprep.subr.bf16.mxu0 %v2491_v13  ;;  %v2507_v34 = vcombine.high %v122_v28, %v126_v29  ;;  %v130_v36 = vld [vmem:[#allocation4 + $0x140] sm:$0xff]  ;;  %563 = vmatprep.subr.bf16.mxu1 %v2493_v30  ;;  %v2506_v41 = vcombine.low %v122_v28, %v126_v29  ;;  %v2509_v46 = vcombine.high %v123_v39, %v127_v40  ;;  %v131_v47 = vld [vmem:[#allocation4 + $0x148] sm:$0xff]  ;;  %v101_v20 = vld [vmem:[#allocation4 + $0x58] sm:$0xff] }
  0x44   :  { %v134_v37 = vld [vmem:[#allocation4 + $0x160] sm:$0xff]  ;;  %v135_v48 = vld [vmem:[#allocation4 + $0x168] sm:$0xff]  ;;  %v2508_v53 = vcombine.low %v123_v39, %v127_v40  ;;  %v2481_v19 = vcombine.high %v93_v10, %v97_v12  ;;  %v105_v21 = vld [vmem:[#allocation4 + $0x78] sm:$0xff]  ;;  %v2494_v30 = vcombine.low %v108_v17, %v112_v18 }
  0x45   :  { %v2515_v42 = vcombine.high %v130_v36, %v134_v37  ;;  %v138_v44 = vld [vmem:[#allocation4 + $0x180] sm:$0xff]  ;;  %v2514_v49 = vcombine.low %v130_v36, %v134_v37  ;;  %v2517_v54 = vcombine.high %v131_v47, %v135_v48  ;;  %v139_v55 = vld [vmem:[#allocation4 + $0x188] sm:$0xff]  ;;  %v2516_v59 = vcombine.low %v131_v47, %v135_v48  ;;  %v116_v23 = vld [vmem:[#allocation4 + $0xd0] sm:$0xff] }
  0x46   :  { %521 = vmatpush1.bf16.msra.mxu0 %v2490_v24  ;;  %564 = vmatpush1.bf16.msra.mxu1 %v2492_v35  ;;  %v142_v45 = vld [vmem:[#allocation4 + $0x1a0] sm:$0xff]  ;;  %v143_v56 = vld [vmem:[#allocation4 + $0x1a8] sm:$0xff]  ;;  %v2495_v24 = vcombine.high %v108_v17, %v112_v18  ;;  %v120_v25 = vld [vmem:[#allocation4 + $0xf0] sm:$0xff]  ;;  %v2489_v27 = vcombine.high %v101_v20, %v105_v21 }
  0x47   :  { %522 = vmatprep.subr.bf16.mxu0 %v2499_v26  ;;  %565 = vmatprep.subr.bf16.mxu1 %v2501_v38  ;;  %v2523_v50 = vcombine.high %v138_v44, %v142_v45  ;;  %v146_v51 = vld [vmem:[#allocation4 + $0x1c0] sm:$0xff]  ;;  %v2522_v57 = vcombine.low %v138_v44, %v142_v45  ;;  %v147_v60 = vld [vmem:[#allocation4 + $0x1c8] sm:$0xff]  ;;  %v2525_v62 = vcombine.high %v139_v55, %v143_v56  ;;  %v109_v28 = vld [vmem:[#allocation4 + $0x98] sm:$0xff] }
  0x48   :  { %v150_v52 = vld [vmem:[#allocation4 + $0x1e0] sm:$0xff]  ;;  %v151_v0 = vld [vmem:[#allocation4 + $0x1e8] sm:$0xff]  ;;  %v2524_v5 = vcombine.low %v139_v55, %v143_v56  ;;  %v2480_v26 = vcombine.low %v93_v10, %v97_v12  ;;  %v113_v29 = vld [vmem:[#allocation4 + $0xb8] sm:$0xff]  ;;  %v2503_v31 = vcombine.high %v116_v23, %v120_v25  ;;  %v2502_v38 = vcombine.low %v116_v23, %v120_v25 }
  0x49   :  { %v2531_v58 = vcombine.high %v146_v51, %v150_v52  ;;  %v2530_v1 = vcombine.low %v146_v51, %v150_v52  ;;  %v84_v3 = vld [vmem:[%s3416_s0] sm:$0xff]  ;;  %v85_v4 = vld [vmem:[%s3416_s0 + $0x8] sm:$0xff]  ;;  %v2533_v9 = vcombine.high %v147_v60, %v151_v0  ;;  %v2532_v15 = vcombine.low %v147_v60, %v151_v0  ;;  %v124_v32 = vld [vmem:[#allocation4 + $0x110] sm:$0xff] }
  0x4a   :  { %523 = vmatpush1.bf16.msra.mxu0 %v2498_v33  ;;  %566 = vmatpush1.bf16.msra.mxu1 %v2500_v43  ;;  %v3308_v11 = vpack.c.bf16 %v85_v4, %v84_v3  ;;  %v2488_v33 = vcombine.low %v101_v20, %v105_v21  ;;  %v2497_v35 = vcombine.high %v109_v28, %v113_v29  ;;  %v117_v36 = vld [vmem:[#allocation4 + $0xd8] sm:$0xff]  ;;  %v132_v39 = vld [vmem:[#allocation4 + $0x150] sm:$0xff]  ;;  %v2857_v8 = vld [vmem:[#allocation6] ss:$12 sps:$4 sm:$0xff]  }
  0x4b   :  { %524 = vmatprep.subr.bf16.mxu0 %v2507_v34  ;;  %567 = vmatprep.subr.bf16.mxu1 %v2509_v46  ;;  %v128_v34 = vld [vmem:[#allocation4 + $0x130] sm:$0xff]  ;;  %v121_v37 = vld [vmem:[#allocation4 + $0xf8] sm:$0xff]  ;;  %v2889_v17 = vld [vmem:[#allocation6 + $0xe0] ss:$12 sps:$4 sm:$0xff]  }
  0x4c   :  { %v2511_v40 = vcombine.high %v124_v32, %v128_v34  ;;  %v2505_v43 = vcombine.high %v117_v36, %v121_v37  ;;  %v125_v44 = vld [vmem:[#allocation4 + $0x118] sm:$0xff]  ;;  %v2510_v46 = vcombine.low %v124_v32, %v128_v34  ;;  %v140_v48 = vld [vmem:[#allocation4 + $0x190] sm:$0xff]  ;;  %v2890_v20 = vld [vmem:[#allocation6 + $0x20] ss:$12 sps:$4 sm:$0xff]  }
  0x4d   :  { %v129_v45 = vld [vmem:[#allocation4 + $0x138] sm:$0xff]  ;;  %v152_v55 = vld [vmem:[#allocation4 + $0x1f0] sm:$0xff]  ;;  %v2910_v34 = vld [vmem:[#allocation6 + $0x80] ss:$12 sps:$4 sm:$0xff]  }
  0x4e   :  { %525 = vmatpush1.bf16.msra.mxu0 %v2506_v41  ;;  %568 = vmatpush1.bf16.msra.mxu1 %v2508_v53  ;;  %v136_v41 = vld [vmem:[#allocation4 + $0x170] sm:$0xff]  ;;  %v133_v51 = vld [vmem:[#allocation4 + $0x158] sm:$0xff] }
  0x4f   :  { %526 = vmatprep.subr.bf16.mxu0 %v2515_v42  ;;  %569 = vmatprep.subr.bf16.mxu1 %v2517_v54  ;;  %v2496_v42 = vcombine.low %v109_v28, %v113_v29  ;;  %v2519_v47 = vcombine.high %v132_v39, %v136_v41  ;;  %v137_v52 = vld [vmem:[#allocation4 + $0x178] sm:$0xff]  ;;  %v2518_v53 = vcombine.low %v132_v39, %v136_v41  ;;  %v148_v54 = vld [vmem:[#allocation4 + $0x1d0] sm:$0xff] }
  0x50   :  { %v2521_v60 = vcombine.high %v133_v51, %v137_v52  ;;  %v2520_v63 = vcombine.low %v133_v51, %v137_v52  ;;  %v149_v0 = vld [vmem:[#allocation4 + $0x1d8] sm:$0xff]  ;;  %v2859_v4 = vld [vmem:[#allocation6 + $0x4] ss:$12 sps:$4 sm:$0xff]   ;;  %v2884_v10 = vld [vmem:[#allocation6 + $0xc8] ss:$12 sps:$4 sm:$0xff]  }
  0x51   :  { %v2863_v18 = vld [vmem:[#allocation6 + $0x30] ss:$12 sps:$4 sm:$0xff]   ;;  %v2894_v21 = vld [vmem:[#allocation6 + $0xf8] ss:$12 sps:$4 sm:$0xff]   ;;  %v2904_v29 = vld [vmem:[#allocation6 + $0x128] ss:$12 sps:$4 sm:$0xff]  }
  0x52   :  { %527 = vmatpush1.bf16.msra.mxu0 %v2514_v49  ;;  %570 = vmatpush1.bf16.msra.mxu1 %v2516_v59  ;;  %v144_v49 = vld [vmem:[#allocation4 + $0x1b0] sm:$0xff]  ;;  %v145_v59 = vld [vmem:[#allocation4 + $0x1b8] sm:$0xff] }
  0x53   :  { %528 = vmatprep.subr.bf16.mxu0 %v2523_v50  ;;  %571 = vmatprep.subr.bf16.mxu1 %v2525_v62  ;;  %v2513_v50 = vcombine.high %v125_v44, %v129_v45  ;;  %v2527_v56 = vcombine.high %v140_v48, %v144_v49  ;;  %v2526_v61 = vcombine.low %v140_v48, %v144_v49  ;;  %v2871_v23 = vld [vmem:[#allocation6 + $0x64] ss:$12 sps:$4 sm:$0xff]   ;;  %v2877_v13 = vld [vmem:[#allocation6 + $0x94] ss:$12 sps:$4 sm:$0xff]   ;;  %v2918_v51 = vld [vmem:[#allocation6 + $0x16c] ss:$12 sps:$4 sm:$0xff]  }
  0x54   :  { %v2535_v62 = vcombine.high %v148_v54, %v152_v55  ;;  %v2899_v25 = vld [vmem:[#allocation6 + $0x110] ss:$12 sps:$4 sm:$0xff]   ;;  %v2886_v39 = vld [vmem:[#allocation6 + $0xd8] ss:$12 sps:$4 sm:$0xff]   ;;  %v2913_v48 = vld [vmem:[#allocation6 + $0x154] ss:$12 sps:$4 sm:$0xff]  }
  0x55   :  { %v2900_v28 = vld [vmem:[#allocation6 + $0x50] ss:$12 sps:$4 sm:$0xff]  }
  0x56   :  { %529 = vmatpush1.bf16.msra.mxu0 %v2522_v57  ;;  %572 = vmatpush1.bf16.msra.mxu1 %v2524_v5  ;;  %v2512_v57 = vcombine.low %v125_v44, %v129_v45  ;;  %v2534_v5 = vcombine.low %v148_v54, %v152_v55  ;;  %v2875_v32 = vld [vmem:[#allocation6 + $0x90] ss:$12 sps:$4 sm:$0xff]   ;;  %v2901_v45 = vld [vmem:[#allocation6 + $0x120] ss:$12 sps:$4 sm:$0xff]   ;;  %v2916_v54 = vld [vmem:[#allocation6 + $0x168] ss:$12 sps:$4 sm:$0xff]  }
  0x57   :  { %530 = vmatprep.subr.bf16.mxu0 %v2531_v58  ;;  %573 = vmatprep.subr.bf16.mxu1 %v2533_v9  ;;  %v141_v58 = vld [vmem:[#allocation4 + $0x198] sm:$0xff]  ;;  %v2903_v44 = vld [vmem:[#allocation6 + $0x124] ss:$12 sps:$4 sm:$0xff]  }
  0x58   :  { %v2529_v3 = vcombine.high %v141_v58, %v145_v59  ;;  %v2862_v9 = vld [vmem:[#allocation6 + $0x1c] ss:$12 sps:$4 sm:$0xff]   ;;  %v2923_v55 = vld [vmem:[#allocation6 + $0x184] ss:$12 sps:$4 sm:$0xff]  }
  0x59   :  { %v2891_v41 = vld [vmem:[#allocation6 + $0xf0] ss:$12 sps:$4 sm:$0xff]  }
  0x5a   :  { %531 = vmatpush1.bf16.msra.mxu0 %v2530_v1  ;;  %574 = vmatpush1.bf16.msra.mxu1 %v2532_v15  ;;  %v153_v1 = vld [vmem:[#allocation4 + $0x1f8] sm:$0xff]  ;;  %v2865_v15 = vld [vmem:[#allocation6 + $0x34] ss:$12 sps:$4 sm:$0xff]  }
  0x5b   :  { %602 = vmatprep.subr.bf16.mxu0 %v2479_v6  ;;  %645 = vmatprep.subr.bf16.mxu1 %v2481_v19  ;;  %v2528_v6 = vcombine.low %v141_v58, %v145_v59  ;;  %v2537_v7 = vcombine.high %v149_v0, %v153_v1  ;;  %v2536_v12 = vcombine.low %v149_v0, %v153_v1  ;;  %v2868_v19 = vld [vmem:[#allocation6 + $0x4c] ss:$12 sps:$4 sm:$0xff]   ;;  %v2911_v49 = vld [vmem:[#allocation6 + $0x150] ss:$12 sps:$4 sm:$0xff]  }
  0x5c   :  { %v2919_v52 = vld [vmem:[#allocation6 + $0x170] ss:$12 sps:$4 sm:$0xff]  }
  0x5d   :  { %2540 = vmatmul.mubr.msk.bf16.vlgmr.msra.gmra.mrb[0].mxu0 %vm3310_vm1, %v3308_v11  ;;  %2543 = vmatmul.mubr.msk.bf16.vlgmr.msra.gmra.mrb[0].mxu1 %vm3310_vm1, %v3308_v11 }
  0x5e   :  { %603 = vmatpush1.bf16.msra.mxu0 %v2478_v14  ;;  %634 = vmatprep.mubr.bf16.mxu0 %v3190_v2  ;;  %v2860_v14 = vld [vmem:[#allocation6 + $0x18] ss:$12 sps:$4 sm:$0xff]  }
  0x5f   :  { %604 = vmatprep.subr.bf16.mxu0 %v2487_v16  ;;  %646 = vmatpush1.bf16.msra.mxu1 %v2480_v26  ;;  %v2885_v16 = vld [vmem:[#allocation6 + $0x8] ss:$12 sps:$4 sm:$0xff]   ;;  %v2869_v26 = vld [vmem:[#allocation6 + $0x60] ss:$12 sps:$4 sm:$0xff]  }
  0x60   :  { %647 = vmatprep.subr.bf16.mxu1 %v2489_v27  ;;  %677 = vmatprep.mubr.bf16.mxu1 %v3190_v2  ;;  %v2504_v2 = vcombine.low %v117_v36, %v121_v37  ;;  %v2874_v27 = vld [vmem:[#allocation6 + $0x7c] ss:$12 sps:$4 sm:$0xff]   ;;  %v2883_v36 = vld [vmem:[#allocation6 + $0xc4] ss:$12 sps:$4 sm:$0xff]   ;;  %v2881_v37 = vld [vmem:[#allocation6 + $0xc0] ss:$12 sps:$4 sm:$0xff]  }
  0x62   :  { %605 = vmatpush1.bf16.msra.mxu0 %v2486_v22  ;;  %v2866_v22 = vld [vmem:[#allocation6 + $0x48] ss:$12 sps:$4 sm:$0xff]  }
  0x63   :  { %606 = vmatprep.subr.bf16.mxu0 %v2495_v24  ;;  %648 = vmatpush1.bf16.msra.mxu1 %v2488_v33  ;;  %v2895_v24 = vld [vmem:[#allocation6 + $0x38] ss:$12 sps:$4 sm:$0xff]  }
  0x64   :  { %649 = vmatprep.subr.bf16.mxu1 %v2497_v35  ;;  %v2880_v33 = vld [vmem:[#allocation6 + $0xac] ss:$12 sps:$4 sm:$0xff]   ;;  %v2878_v35 = vld [vmem:[#allocation6 + $0xa8] ss:$12 sps:$4 sm:$0xff]  }
  0x66   :  { %607 = vmatpush1.bf16.msra.mxu0 %v2494_v30  ;;  %v2905_v30 = vld [vmem:[#allocation6 + $0x68] ss:$12 sps:$4 sm:$0xff]  }
  0x67   :  { %608 = vmatprep.subr.bf16.mxu0 %v2503_v31  ;;  %650 = vmatpush1.bf16.msra.mxu1 %v2496_v42  ;;  %v2909_v31 = vld [vmem:[#allocation6 + $0x140] ss:$12 sps:$4 sm:$0xff]  }
  0x68   :  { %651 = vmatprep.subr.bf16.mxu1 %v2505_v43  ;;  %v2898_v42 = vld [vmem:[#allocation6 + $0x10c] ss:$12 sps:$4 sm:$0xff]   ;;  %v2896_v43 = vld [vmem:[#allocation6 + $0x108] ss:$12 sps:$4 sm:$0xff]  }
  0x6a   :  { %609 = vmatpush1.bf16.msra.mxu0 %v2502_v38  ;;  %v2888_v38 = vld [vmem:[#allocation6 + $0xdc] ss:$12 sps:$4 sm:$0xff]  }
  0x6b   :  { %610 = vmatprep.subr.bf16.mxu0 %v2511_v40  ;;  %652 = vmatpush1.bf16.msra.mxu1 %v2504_v2  ;;  %v2893_v40 = vld [vmem:[#allocation6 + $0xf4] ss:$12 sps:$4 sm:$0xff]   ;;  %v2914_v2 = vld [vmem:[#allocation6 + $0x158] ss:$12 sps:$4 sm:$0xff]  }
  0x6c   :  { %653 = vmatprep.subr.bf16.mxu1 %v2513_v50  ;;  %v2915_v50 = vld [vmem:[#allocation6 + $0x98] ss:$12 sps:$4 sm:$0xff]  }
  0x6e   :  { %611 = vmatpush1.bf16.msra.mxu0 %v2510_v46  ;;  %v2908_v46 = vld [vmem:[#allocation6 + $0x13c] ss:$12 sps:$4 sm:$0xff]  }
  0x6f   :  { %612 = vmatprep.subr.bf16.mxu0 %v2519_v47  ;;  %654 = vmatpush1.bf16.msra.mxu1 %v2512_v57  ;;  %v2906_v47 = vld [vmem:[#allocation6 + $0x138] ss:$12 sps:$4 sm:$0xff]   ;;  %v156_v57 = vlaneseq }
  0x70   :  { %655 = vmatprep.subr.bf16.mxu1 %v2521_v60  ;;  %v3336_v60 = vld [vmem:[%s3418_s2] sm:$0xff] }
  0x71   :  { %v3328_v58 = vshrl.u32 %v156_v57, 7  ;;  %v2954_v57 = vld [vmem:[#allocation6 + $0x2d8] ss:$12 sps:$4 sm:$0xff]  }
  0x72   :  { %613 = vmatpush1.bf16.msra.mxu0 %v2518_v53  ;;  %v2920_v53 = vld [vmem:[#allocation6 + $0xb0] ss:$12 sps:$4 sm:$0xff]  }
  0x73   :  { %614 = vmatprep.subr.bf16.mxu0 %v2527_v56  ;;  %656 = vmatpush1.bf16.msra.mxu1 %v2520_v63  ;;  %v2924_v56 = vld [vmem:[#allocation6 + $0x248] ss:$12 sps:$4 sm:$0xff]   ;;  %v3331_v59 = vsub.s32 0, %v3328_v58  ;;  %v3346_v0 = vsub.s32 2, %v3328_v58  ;;  %v170_v1 = vsub.s32 3, %v3328_v58 }
  0x74   :  { %657 = vmatprep.subr.bf16.mxu1 %v2529_v3 }
  0x76   :  { %615 = vmatpush1.bf16.msra.mxu0 %v2526_v61  ;;  %v3339_v61 = vsub.s32 1, %v3328_v58 }
  0x77   :  { %616 = vmatprep.subr.bf16.mxu0 %v2535_v62  ;;  %658 = vmatpush1.bf16.msra.mxu1 %v2528_v6  ;;  %v159_v62 = vrot.slane %v3336_v60, %v3331_v59 }
  0x78   :  { %659 = vmatprep.subr.bf16.mxu1 %v2537_v7  ;;  %v163_v63 = vrot.slane %v3336_v60, %v3339_v61 }
  0x7a   :  { %617 = vmatpush1.bf16.msra.mxu0 %v2534_v5 }
  0x7b   :  { %1369 = vmatprep.subr.bf16.mxu0 %v2859_v4  ;;  %660 = vmatpush1.bf16.msra.mxu1 %v2536_v12  ;;  %v171_v12 = vrot.slane %v3336_v60, %v170_v1  ;;  %v182_v1 = vsub.s32 6, %v3328_v58 }
  0x7c   :  { %2744 = vmatprep.subr.bf16.mxu1 %v2884_v10 }
  0x7d   :  { %2546 = vmatmul.mubr.msk.bf16.vlgmr.msra.gmra.mrb[4].mxu0 %vm3310_vm1, %v3308_v11 }
  0x7e   :  { %1370 = vmatpush1.bf16.msra.mxu0 %v2857_v8  ;;  %2549 = vmatmul.mubr.msk.bf16.vlgmr.msra.gmra.mrb[4].mxu1 %vm3310_vm1, %v3308_v11  ;;  %v2872_v11 = vld [vmem:[#allocation6 + $0x78] ss:$12 sps:$4 sm:$0xff]   ;;  %v167_v8 = vrot.slane %v3336_v60, %v3346_v0 }
  0x7f   :  { %1371 = vmatprep.subr.bf16.mxu0 %v2862_v9  ;;  %2745 = vmatpush3.bf16.msra.mxu1 %v2885_v16 }
  0x80   :  { %2746 = vmatprep.subr.bf16.mxu1 %v2889_v17 }
  0x82   :  { %1372 = vmatpush1.bf16.msra.mxu0 %v2860_v14 }
  0x83   :  { %1373 = vmatprep.subr.bf16.mxu0 %v2865_v15  ;;  %2747 = vmatpush3.bf16.msra.mxu1 %v2890_v20 }
  0x84   :  { %2748 = vmatprep.subr.bf16.mxu1 %v2894_v21 }
  0x86   :  { %1374 = vmatpush1.bf16.msra.mxu0 %v2863_v18 }
  0x87   :  { %1375 = vmatprep.subr.bf16.mxu0 %v2868_v19  ;;  %2749 = vmatpush3.bf16.msra.mxu1 %v2895_v24 }
  0x88   :  { %2750 = vmatprep.subr.bf16.mxu1 %v2899_v25 }
  0x8a   :  { %1376 = vmatpush1.bf16.msra.mxu0 %v2866_v22 }
  0x8b   :  { %1377 = vmatprep.subr.bf16.mxu0 %v2871_v23  ;;  %2751 = vmatpush3.bf16.msra.mxu1 %v2900_v28 }
  0x8c   :  { %2752 = vmatprep.subr.bf16.mxu1 %v2904_v29 }
  0x8e   :  { %1378 = vmatpush1.bf16.msra.mxu0 %v2869_v26  ;;  %v2921_v26 = vld [vmem:[#allocation6 + $0x180] ss:$12 sps:$4 sm:$0xff]  }
  0x8f   :  { %1379 = vmatprep.subr.bf16.mxu0 %v2874_v27  ;;  %2753 = vmatpush3.bf16.msra.mxu1 %v2905_v30  ;;  %v2925_v27 = vld [vmem:[#allocation6 + $0x188] ss:$12 sps:$4 sm:$0xff]   ;;  %v2929_v30 = vld [vmem:[#allocation6 + $0x260] ss:$12 sps:$4 sm:$0xff]  }
  0x90   :  { %2754 = vmatprep.subr.bf16.mxu1 %v2909_v31 }
  0x92   :  { %1380 = vmatpush1.bf16.msra.mxu0 %v2872_v11 }
  0x93   :  { %1381 = vmatprep.subr.bf16.mxu0 %v2877_v13  ;;  %2755 = vmatpush3.bf16.msra.mxu1 %v2910_v34  ;;  %v2928_v13 = vld [vmem:[#allocation6 + $0x19c] ss:$12 sps:$4 sm:$0xff]  }
  0x94   :  { %2756 = vmatprep.subr.bf16.mxu1 %v2914_v2  ;;  %v2941_v2 = vld [vmem:[#allocation6 + $0x1e0] ss:$12 sps:$4 sm:$0xff]  }
  0x96   :  { %1382 = vmatpush1.bf16.msra.mxu0 %v2875_v32 }
  0x97   :  { %1383 = vmatprep.subr.bf16.mxu0 %v2880_v33  ;;  %2757 = vmatpush3.bf16.msra.mxu1 %v2915_v50  ;;  %v2948_v50 = vld [vmem:[#allocation6 + $0x1fc] ss:$12 sps:$4 sm:$0xff]  }
  0x98   :  { %2758 = vmatprep.subr.bf16.mxu1 %v2919_v52  ;;  %v174_v52 = vsub.s32 4, %v3328_v58 }
  0x9a   :  { %1384 = vmatpush1.bf16.msra.mxu0 %v2878_v35  ;;  %v2926_v35 = vld [vmem:[#allocation6 + $0x198] ss:$12 sps:$4 sm:$0xff]  }
  0x9b   :  { %1385 = vmatprep.subr.bf16.mxu0 %v2883_v36  ;;  %2759 = vmatpush3.bf16.msra.mxu1 %v2920_v53  ;;  %v2930_v36 = vld [vmem:[#allocation6 + $0x1a0] ss:$12 sps:$4 sm:$0xff]   ;;  %v178_v53 = vsub.s32 5, %v3328_v58 }
  0x9c   :  { %2766 = vmatprep.subr.bf16.mxu1 %v2924_v56  ;;  %v2953_v56 = vld [vmem:[#allocation6 + $0x214] ss:$12 sps:$4 sm:$0xff]  }
  0x9e   :  { %1386 = vmatpush1.bf16.msra.mxu0 %v2881_v37 }
  0x9f   :  { %1387 = vmatprep.subr.bf16.mxu0 %v2888_v38  ;;  %v2933_v38 = vld [vmem:[#allocation6 + $0x1b4] ss:$12 sps:$4 sm:$0xff]  }
  0xa2   :  { %1388 = vmatpush1.bf16.msra.mxu0 %v2886_v39  ;;  %v2934_v39 = vld [vmem:[#allocation6 + $0x278] ss:$12 sps:$4 sm:$0xff]  }
  0xa3   :  { %1389 = vmatprep.subr.bf16.mxu0 %v2893_v40 }
  0xa6   :  { %1390 = vmatpush1.bf16.msra.mxu0 %v2891_v41  ;;  %v2931_v41 = vld [vmem:[#allocation6 + $0x1b0] ss:$12 sps:$4 sm:$0xff]  }
  0xa7   :  { %1391 = vmatprep.subr.bf16.mxu0 %v2898_v42  ;;  %v2935_v42 = vld [vmem:[#allocation6 + $0x1b8] ss:$12 sps:$4 sm:$0xff]  }
  0xaa   :  { %1392 = vmatpush1.bf16.msra.mxu0 %v2896_v43  ;;  %v2938_v43 = vld [vmem:[#allocation6 + $0x1cc] ss:$12 sps:$4 sm:$0xff]  }
  0xab   :  { %1393 = vmatprep.subr.bf16.mxu0 %v2903_v44  ;;  %v2939_v44 = vld [vmem:[#allocation6 + $0x290] ss:$12 sps:$4 sm:$0xff]  }
  0xae   :  { %1394 = vmatpush1.bf16.msra.mxu0 %v2901_v45  ;;  %v2936_v45 = vld [vmem:[#allocation6 + $0x1c8] ss:$12 sps:$4 sm:$0xff]  }
  0xaf   :  { %1395 = vmatprep.subr.bf16.mxu0 %v2908_v46  ;;  %v2940_v46 = vld [vmem:[#allocation6 + $0x1d0] ss:$12 sps:$4 sm:$0xff]  }
  0xb2   :  { %1396 = vmatpush1.bf16.msra.mxu0 %v2906_v47  ;;  %v2943_v47 = vld [vmem:[#allocation6 + $0x1e4] ss:$12 sps:$4 sm:$0xff]  }
  0xb3   :  { %1397 = vmatprep.subr.bf16.mxu0 %v2913_v48  ;;  %v2944_v48 = vld [vmem:[#allocation6 + $0x2a8] ss:$12 sps:$4 sm:$0xff]  }
  0xb6   :  { %1398 = vmatpush1.bf16.msra.mxu0 %v2911_v49  ;;  %v2945_v49 = vld [vmem:[#allocation6 + $0x1e8] ss:$12 sps:$4 sm:$0xff]  }
  0xb7   :  { %1399 = vmatprep.subr.bf16.mxu0 %v2918_v51  ;;  %v2949_v51 = vld [vmem:[#allocation6 + $0x2c0] ss:$12 sps:$4 sm:$0xff]  }
  0xba   :  { %1400 = vmatpush1.bf16.msra.mxu0 %v2916_v54  ;;  %v2946_v54 = vld [vmem:[#allocation6 + $0x1f8] ss:$12 sps:$4 sm:$0xff]  }
  0xbb   :  { %1412 = vmatprep.subr.bf16.mxu0 %v2923_v55  ;;  %v2950_v55 = vld [vmem:[#allocation6 + $0x200] ss:$12 sps:$4 sm:$0xff]  }
 0x130   :  { %v550_v3 = vpop.f32.mrb[0].mxu0  ;;  %v593_v17 = vpop.f32.mrb[0].mxu1 }
 0x131   :  { %v551_v4 = vadd.f32 %v550_v3, %v159_v62  ;;  %v552_v5 = vpop.f32.mrb[1].mxu0  ;;  %v594_v20 = vadd.f32 %v593_v17, %v167_v8  ;;  %v595_v21 = vpop.f32.mrb[1].mxu1  ;;  %v186_v3 = vsub.s32 7, %v3328_v58 }
 0x132   :  { %v553_v6 = vadd.f32 %v552_v5, %v163_v63  ;;  %v554_v7 = vpop.f32.mrb[2].mxu0  ;;  %v596_v23 = vadd.f32 %v595_v21, %v171_v12  ;;  %v597_v24 = vpop.f32.mrb[2].mxu1  ;;  %v2955_v5 = vld [vmem:[#allocation6 + $0x218] ss:$12 sps:$4 sm:$0xff]  }
 0x133   :  { %v555_v9 = vadd.f32 %v554_v7, %v159_v62  ;;  %v556_v10 = vpop.f32.mrb[3].mxu0  ;;  %v688_v15 = vmax.f32 %v551_v4, 0.0  ;;  %v690_v28 = vmax.f32 %v594_v20, 0.0  ;;  %v598_v29 = vadd.f32 %v597_v24, %v167_v8  ;;  %v599_v11 = vpop.f32.mrb[3].mxu1  ;;  %v2951_v4 = vld [vmem:[#allocation6 + $0x210] ss:$12 sps:$4 sm:$0xff]  }
 0x134   :  { %v557_v14 = vadd.f32 %v556_v10, %v163_v63  ;;  %v689_v18 = vmax.f32 %v553_v6, 0.0  ;;  %v691_v31 = vmax.f32 %v596_v23, 0.0  ;;  %v600_v32 = vadd.f32 %v599_v11, %v171_v12  ;;  %v2958_v7 = vld [vmem:[#allocation6 + $0x22c] ss:$12 sps:$4 sm:$0xff]   ;;  %v2959_v8 = vld [vmem:[#allocation6 + $0x2f0] ss:$12 sps:$4 sm:$0xff]  }
 0x135   :  { %v696_v16 = vmax.f32 %v555_v9, 0.0  ;;  %v698_v33 = vmax.f32 %v598_v29, 0.0  ;;  %v175_v62 = vrot.slane %v3336_v60, %v174_v52  ;;  %v179_v63 = vrot.slane %v3336_v60, %v178_v53  ;;  %v2960_v20 = vld [vmem:[#allocation6 + $0x230] ss:$12 sps:$4 sm:$0xff]   ;;  %v2979_v52 = vld [vmem:[#allocation6 + $0x288] ss:$12 sps:$4 sm:$0xff]  }
 0x136   :  { %v697_v19 = vmax.f32 %v557_v14, 0.0  ;;  %v699_v34 = vmax.f32 %v600_v32, 0.0  ;;  %v187_v58 = vrot.slane %v3336_v60, %v186_v3  ;;  %v2963_v23 = vld [vmem:[#allocation6 + $0x244] ss:$12 sps:$4 sm:$0xff]   ;;  %v2982_v53 = vld [vmem:[#allocation8 + $0x48] ss:$12 sps:$4 sm:$0xff]  }
 0x137   :  { %v704_v22 = vpack.c.bf16 %v696_v16, %v688_v15  ;;  %v3352_v37 = vpack.c.bf16 %v698_v33, %v690_v28  ;;  %v183_v15 = vrot.slane %v3336_v60, %v182_v1  ;;  %v2966_v24 = vld [vmem:[#allocation8 + $0x4] ss:$12 sps:$4 sm:$0xff]   ;;  %v2961_v60 = vld [vmem:[#allocation6 + $0x240] ss:$12 sps:$4 sm:$0xff]  }
 0x138   :  { %v705_v25 = vpack.c.bf16 %v697_v19, %v689_v18  ;;  %v707_v40 = vpack.c.bf16 %v699_v34, %v691_v31  ;;  %v2956_v19 = vld [vmem:[#allocation6 + $0x228] ss:$12 sps:$4 sm:$0xff]   ;;  %v2964_v31 = vld [vmem:[#allocation8] ss:$12 sps:$4 sm:$0xff]   ;;  %v2991_v1 = vld [vmem:[#allocation6 + $0x2b8] ss:$12 sps:$4 sm:$0xff]  }
 0x139   :  { %v2994_v3 = vld [vmem:[#allocation8 + $0x78] ss:$12 sps:$4 sm:$0xff]  }
 0x13a   :  { %1401 = vmatprep.mubr.bf16.mxu0 %v705_v25  ;;  %1487 = vmatprep.mubr.bf16.mxu1 %v705_v25 }
 0x13b   :  { %1402 = vmatmul.mubr.bf16.vlgmr.msra.gmra.mrb[8].mxu0 %v704_v22  ;;  %1488 = vmatmul.mubr.bf16.vlgmr.msra.gmra.mrb[8].mxu1 %v704_v22 }
 0x13c   :  { %1413 = vmatpush1.bf16.msra.mxu0 %v2921_v26  ;;  %2767 = vmatpush3.bf16.msra.mxu1 %v2925_v27 }
 0x13d   :  { %1414 = vmatprep.subr.bf16.mxu0 %v2928_v13  ;;  %2768 = vmatprep.subr.bf16.mxu1 %v2929_v30 }
 0x13e   :  { %1444 = vmatprep.mubr.bf16.mxu0 %v707_v40  ;;  %1528 = vmatprep.mubr.bf16.mxu1 %v707_v40 }
 0x140   :  { %1415 = vmatpush1.bf16.msra.mxu0 %v2926_v35  ;;  %2769 = vmatpush3.bf16.msra.mxu1 %v2930_v36  ;;  %v2969_v36 = vld [vmem:[#allocation6 + $0x25c] ss:$12 sps:$4 sm:$0xff]  }
 0x141   :  { %1416 = vmatprep.subr.bf16.mxu0 %v2933_v38  ;;  %2770 = vmatprep.subr.bf16.mxu1 %v2934_v39  ;;  %v2972_v38 = vld [vmem:[#allocation8 + $0x1c] ss:$12 sps:$4 sm:$0xff]  }
 0x144   :  { %1417 = vmatpush1.bf16.msra.mxu0 %v2931_v41  ;;  %2771 = vmatpush3.bf16.msra.mxu1 %v2935_v42 }
 0x145   :  { %1418 = vmatprep.subr.bf16.mxu0 %v2938_v43  ;;  %2772 = vmatprep.subr.bf16.mxu1 %v2939_v44  ;;  %v2967_v43 = vld [vmem:[#allocation6 + $0x258] ss:$12 sps:$4 sm:$0xff]  }
 0x146   :  { %v2970_v44 = vld [vmem:[#allocation8 + $0x18] ss:$12 sps:$4 sm:$0xff]  }
 0x148   :  { %1419 = vmatpush1.bf16.msra.mxu0 %v2936_v45  ;;  %2773 = vmatpush3.bf16.msra.mxu1 %v2940_v46  ;;  %v2975_v46 = vld [vmem:[#allocation6 + $0x274] ss:$12 sps:$4 sm:$0xff]  }
 0x149   :  { %1420 = vmatprep.subr.bf16.mxu0 %v2943_v47  ;;  %2774 = vmatprep.subr.bf16.mxu1 %v2944_v48  ;;  %v2978_v47 = vld [vmem:[#allocation8 + $0x34] ss:$12 sps:$4 sm:$0xff]  }
 0x14c   :  { %1421 = vmatpush1.bf16.msra.mxu0 %v2941_v2  ;;  %2775 = vmatpush3.bf16.msra.mxu1 %v2945_v49  ;;  %v2973_v2 = vld [vmem:[#allocation6 + $0x270] ss:$12 sps:$4 sm:$0xff]  }
 0x14d   :  { %1422 = vmatprep.subr.bf16.mxu0 %v2948_v50  ;;  %2776 = vmatprep.subr.bf16.mxu1 %v2949_v51  ;;  %v2976_v49 = vld [vmem:[#allocation8 + $0x30] ss:$12 sps:$4 sm:$0xff]   ;;  %v2981_v50 = vld [vmem:[#allocation6 + $0x28c] ss:$12 sps:$4 sm:$0xff]  }
 0x14e   :  { %v2984_v51 = vld [vmem:[#allocation8 + $0x4c] ss:$12 sps:$4 sm:$0xff]  }
 0x150   :  { %1423 = vmatpush1.bf16.msra.mxu0 %v2946_v54  ;;  %2777 = vmatpush3.bf16.msra.mxu1 %v2950_v55  ;;  %v636_v6 = vpop.f32.mrb[4].mxu0  ;;  %v2987_v54 = vld [vmem:[#allocation6 + $0x2a4] ss:$12 sps:$4 sm:$0xff]  }
 0x151   :  { %1424 = vmatprep.subr.bf16.mxu0 %v2953_v56  ;;  %2778 = vmatprep.subr.bf16.mxu1 %v2954_v57  ;;  %v637_v9 = vadd.f32 %v636_v6, %v175_v62  ;;  %v638_v10 = vpop.f32.mrb[5].mxu0  ;;  %v679_v26 = vpop.f32.mrb[4].mxu1  ;;  %v2990_v55 = vld [vmem:[#allocation8 + $0x64] ss:$12 sps:$4 sm:$0xff]   ;;  %v2985_v56 = vld [vmem:[#allocation6 + $0x2a0] ss:$12 sps:$4 sm:$0xff]  }
 0x152   :  { %v639_v12 = vadd.f32 %v638_v10, %v179_v63  ;;  %v640_v14 = vpop.f32.mrb[6].mxu0  ;;  %v680_v28 = vadd.f32 %v679_v26, %v183_v15  ;;  %v681_v29 = vpop.f32.mrb[5].mxu1  ;;  %v2988_v57 = vld [vmem:[#allocation8 + $0x60] ss:$12 sps:$4 sm:$0xff]   ;;  %v2997_v6 = vld [vmem:[#allocation6 + $0x2d0] ss:$12 sps:$4 sm:$0xff]  }
 0x153   :  { %v692_v16 = vmax.f32 %v637_v9, 0.0  ;;  %v641_v17 = vadd.f32 %v640_v14, %v175_v62  ;;  %v642_v18 = vpop.f32.mrb[7].mxu0  ;;  %v682_v13 = vadd.f32 %v681_v29, %v187_v58  ;;  %v683_v30 = vpop.f32.mrb[6].mxu1  ;;  %v2993_v62 = vld [vmem:[#allocation6 + $0x2bc] ss:$12 sps:$4 sm:$0xff]  }
 0x154   :  { %1425 = vmatpush1.bf16.msra.mxu0 %v2951_v4  ;;  %2779 = vmatpush3.bf16.msra.mxu1 %v2955_v5  ;;  %v693_v21 = vmax.f32 %v639_v12, 0.0  ;;  %v643_v22 = vadd.f32 %v642_v18, %v179_v63  ;;  %v694_v33 = vmax.f32 %v680_v28, 0.0  ;;  %v684_v34 = vadd.f32 %v683_v30, %v183_v15  ;;  %v685_v35 = vpop.f32.mrb[7].mxu1  ;;  %v2996_v63 = vld [vmem:[#allocation8 + $0x7c] ss:$12 sps:$4 sm:$0xff]  }
 0x155   :  { %1426 = vmatprep.subr.bf16.mxu0 %v2958_v7  ;;  %2780 = vmatprep.subr.bf16.mxu1 %v2959_v8  ;;  %v700_v25 = vmax.f32 %v641_v17, 0.0  ;;  %v695_v39 = vmax.f32 %v682_v13, 0.0  ;;  %v686_v40 = vadd.f32 %v685_v35, %v187_v58  ;;  %v2999_v4 = vld [vmem:[#allocation6 + $0x2d4] ss:$12 sps:$4 sm:$0xff]   ;;  %v3000_v7 = vld [vmem:[#allocation8 + $0x90] ss:$12 sps:$4 sm:$0xff]  }
 0x156   :  { %v701_v27 = vmax.f32 %v643_v22, 0.0  ;;  %v702_v41 = vmax.f32 %v684_v34, 0.0  ;;  %v3002_v5 = vld [vmem:[#allocation8 + $0x94] ss:$12 sps:$4 sm:$0xff]   ;;  %v3005_v8 = vld [vmem:[#allocation6 + $0x2ec] ss:$12 sps:$4 sm:$0xff]  }
 0x157   :  { %v3362_v11 = vpack.c.bf16 %v700_v25, %v692_v16  ;;  %v703_v42 = vmax.f32 %v686_v40, 0.0  ;;  %v3008_v9 = vld [vmem:[#allocation8 + $0xac] ss:$12 sps:$4 sm:$0xff]   ;;  %v3003_v10 = vld [vmem:[#allocation6 + $0x2e8] ss:$12 sps:$4 sm:$0xff]  }
 0x158   :  { %1427 = vmatpush1.bf16.msra.mxu0 %v2956_v19  ;;  %2781 = vmatpush3.bf16.msra.mxu1 %v2960_v20  ;;  %v3364_v32 = vpack.c.bf16 %v701_v27, %v693_v21  ;;  %v3367_v45 = vpack.c.bf16 %v702_v41, %v694_v33  ;;  %v3006_v12 = vld [vmem:[#allocation8 + $0xa8] ss:$12 sps:$4 sm:$0xff]   ;;  %v3011_v14 = vld [vmem:[#allocation8 + $0xc4] ss:$12 sps:$4 sm:$0xff]   ;;  %v3009_v16 = vld [vmem:[#allocation8 + $0xc0] ss:$12 sps:$4 sm:$0xff]  }
 0x159   :  { %1428 = vmatprep.subr.bf16.mxu0 %v2963_v23  ;;  %2200 = vmatprep.subr.bf16.mxu1 %v2966_v24  ;;  %v3369_v48 = vpack.c.bf16 %v703_v42, %v695_v39  ;;  %v3012_v15 = vld [vmem:[#allocation8 + $0xc8] ss:$12 sps:$4 sm:$0xff]   ;;  %v3017_v58 = vld [vmem:[#allocation8 + $0xe0] ss:$12 sps:$4 sm:$0xff]   ;;  %v3014_v19 = vld [vmem:[#allocation8 + $0xd8] ss:$12 sps:$4 sm:$0xff]  }
 0x15a   :  { %v3013_v17 = vld [vmem:[#allocation8 + $0x8] ss:$12 sps:$4 sm:$0xff]   ;;  %v3018_v20 = vld [vmem:[#allocation8 + $0x20] ss:$12 sps:$4 sm:$0xff]   ;;  %v3022_v22 = vld [vmem:[#allocation8 + $0xf8] ss:$12 sps:$4 sm:$0xff]  }
 0x15b   :  { %1529 = vmatmul.mubr.bf16.vlgmr.msra.gmra.mrb[12].mxu1 %v3352_v37  ;;  %v3016_v18 = vld [vmem:[#allocation8 + $0xdc] ss:$12 sps:$4 sm:$0xff]   ;;  %v3021_v21 = vld [vmem:[#allocation8 + $0xf4] ss:$12 sps:$4 sm:$0xff]   ;;  %v3023_v24 = vld [vmem:[#allocation8 + $0x38] ss:$12 sps:$4 sm:$0xff]  }
 0x15c   :  { %1429 = vmatpush1.bf16.msra.mxu0 %v2961_v60  ;;  %2201 = vmatpush1.bf16.msra.mxu1 %v2964_v31  ;;  %v3019_v23 = vld [vmem:[#allocation8 + $0xf0] ss:$12 sps:$4 sm:$0xff]   ;;  %v3026_v25 = vld [vmem:[#allocation8 + $0x10c] ss:$12 sps:$4 sm:$0xff]   ;;  %v3032_v29 = vld [vmem:[#allocation8 + $0x128] ss:$12 sps:$4 sm:$0xff]  }
 0x15d   :  { %1430 = vmatprep.subr.bf16.mxu0 %v2969_v36  ;;  %2202 = vmatprep.subr.bf16.mxu1 %v2972_v38  ;;  %v3027_v26 = vld [vmem:[#allocation8 + $0x110] ss:$12 sps:$4 sm:$0xff]   ;;  %v3029_v13 = vld [vmem:[#allocation8 + $0x120] ss:$12 sps:$4 sm:$0xff]   ;;  %v3033_v30 = vld [vmem:[#allocation8 + $0x68] ss:$12 sps:$4 sm:$0xff]  }
 0x15e   :  { %2232 = vmatprep.mubr.bf16.mxu1 %v3364_v32  ;;  %v3028_v27 = vld [vmem:[#allocation8 + $0x50] ss:$12 sps:$4 sm:$0xff]   ;;  %v3037_v31 = vld [vmem:[#allocation8 + $0x140] ss:$12 sps:$4 sm:$0xff]   ;;  %v3042_v35 = vld [vmem:[#allocation8 + $0x158] ss:$12 sps:$4 sm:$0xff]  }
 0x15f   :  { %v3031_v28 = vld [vmem:[#allocation8 + $0x124] ss:$12 sps:$4 sm:$0xff]   ;;  %v3036_v60 = vld [vmem:[#allocation8 + $0x13c] ss:$12 sps:$4 sm:$0xff]   ;;  %v3038_v33 = vld [vmem:[#allocation8 + $0x80] ss:$12 sps:$4 sm:$0xff]  }
 0x160   :  { %1431 = vmatpush1.bf16.msra.mxu0 %v2967_v43  ;;  %2203 = vmatpush1.bf16.msra.mxu1 %v2970_v44  ;;  %v3041_v34 = vld [vmem:[#allocation8 + $0x154] ss:$12 sps:$4 sm:$0xff]   ;;  %v3039_v36 = vld [vmem:[#allocation8 + $0x150] ss:$12 sps:$4 sm:$0xff]   ;;  %v3043_v38 = vld [vmem:[#allocation8 + $0x98] ss:$12 sps:$4 sm:$0xff]  }
 0x161   :  { %1432 = vmatprep.subr.bf16.mxu0 %v2975_v46  ;;  %2204 = vmatprep.subr.bf16.mxu1 %v2978_v47  ;;  %v3046_v39 = vld [vmem:[#allocation8 + $0x16c] ss:$12 sps:$4 sm:$0xff]   ;;  %v3047_v40 = vld [vmem:[#allocation8 + $0x170] ss:$12 sps:$4 sm:$0xff]   ;;  %v3044_v41 = vld [vmem:[#allocation8 + $0x168] ss:$12 sps:$4 sm:$0xff]  }
 0x162   :  { %v3048_v42 = vld [vmem:[#allocation8 + $0xb0] ss:$12 sps:$4 sm:$0xff]   ;;  %v3052_v44 = vld [vmem:[#allocation8 + $0x248] ss:$12 sps:$4 sm:$0xff]   ;;  %v3049_v46 = vld [vmem:[#allocation8 + $0x180] ss:$12 sps:$4 sm:$0xff]  }
 0x163   :  { %v3051_v43 = vld [vmem:[#allocation8 + $0x184] ss:$12 sps:$4 sm:$0xff]   ;;  %v3053_v47 = vld [vmem:[#allocation8 + $0x188] ss:$12 sps:$4 sm:$0xff]  }
 0x164   :  { %1433 = vmatpush1.bf16.msra.mxu0 %v2973_v2  ;;  %2205 = vmatpush1.bf16.msra.mxu1 %v2976_v49  ;;  %v3056_v2 = vld [vmem:[#allocation8 + $0x19c] ss:$12 sps:$4 sm:$0xff]   ;;  %v3057_v49 = vld [vmem:[#allocation8 + $0x260] ss:$12 sps:$4 sm:$0xff]  }
 0x165   :  { %1434 = vmatprep.subr.bf16.mxu0 %v2981_v50  ;;  %2206 = vmatprep.subr.bf16.mxu1 %v2984_v51  ;;  %v3054_v50 = vld [vmem:[#allocation8 + $0x198] ss:$12 sps:$4 sm:$0xff]   ;;  %v3058_v51 = vld [vmem:[#allocation8 + $0x1a0] ss:$12 sps:$4 sm:$0xff]  }
 0x168   :  { %1435 = vmatpush1.bf16.msra.mxu0 %v2979_v52  ;;  %2207 = vmatpush1.bf16.msra.mxu1 %v2982_v53  ;;  %v3061_v52 = vld [vmem:[#allocation8 + $0x1b4] ss:$12 sps:$4 sm:$0xff]   ;;  %v3062_v53 = vld [vmem:[#allocation8 + $0x278] ss:$12 sps:$4 sm:$0xff]  }
 0x169   :  { %1436 = vmatprep.subr.bf16.mxu0 %v2987_v54  ;;  %2208 = vmatprep.subr.bf16.mxu1 %v2990_v55  ;;  %v3059_v54 = vld [vmem:[#allocation8 + $0x1b0] ss:$12 sps:$4 sm:$0xff]   ;;  %v3063_v55 = vld [vmem:[#allocation8 + $0x1b8] ss:$12 sps:$4 sm:$0xff]  }
 0x16c   :  { %1437 = vmatpush1.bf16.msra.mxu0 %v2985_v56  ;;  %2209 = vmatpush1.bf16.msra.mxu1 %v2988_v57  ;;  %v3066_v56 = vld [vmem:[#allocation8 + $0x1cc] ss:$12 sps:$4 sm:$0xff]   ;;  %v3064_v57 = vld [vmem:[#allocation8 + $0x1c8] ss:$12 sps:$4 sm:$0xff]  }
 0x16d   :  { %1438 = vmatprep.subr.bf16.mxu0 %v2993_v62  ;;  %2210 = vmatprep.subr.bf16.mxu1 %v2996_v63  ;;  %v3068_v62 = vld [vmem:[#allocation8 + $0x1d0] ss:$12 sps:$4 sm:$0xff]  }
 0x16e   :  { %v3071_v63 = vld [vmem:[#allocation8 + $0x1e4] ss:$12 sps:$4 sm:$0xff]  }
 0x170   :  { %1439 = vmatpush1.bf16.msra.mxu0 %v2991_v1  ;;  %2211 = vmatpush1.bf16.msra.mxu1 %v2994_v3  ;;  %v3072_v1 = vld [vmem:[#allocation8 + $0x2a8] ss:$12 sps:$4 sm:$0xff]   ;;  %v3069_v3 = vld [vmem:[#allocation8 + $0x1e0] ss:$12 sps:$4 sm:$0xff]  }
 0x171   :  { %1440 = vmatprep.subr.bf16.mxu0 %v2999_v4  ;;  %2212 = vmatprep.subr.bf16.mxu1 %v3002_v5  ;;  %v3076_v4 = vld [vmem:[#allocation8 + $0x1fc] ss:$12 sps:$4 sm:$0xff]   ;;  %v3077_v5 = vld [vmem:[#allocation8 + $0x2c0] ss:$12 sps:$4 sm:$0xff]  }
 0x174   :  { %1441 = vmatpush1.bf16.msra.mxu0 %v2997_v6  ;;  %2213 = vmatpush1.bf16.msra.mxu1 %v3000_v7  ;;  %v3074_v6 = vld [vmem:[#allocation8 + $0x1f8] ss:$12 sps:$4 sm:$0xff]   ;;  %v3078_v7 = vld [vmem:[#allocation8 + $0x200] ss:$12 sps:$4 sm:$0xff]  }
 0x175   :  { %1442 = vmatprep.subr.bf16.mxu0 %v3005_v8  ;;  %2214 = vmatprep.subr.bf16.mxu1 %v3008_v9  ;;  %v3081_v8 = vld [vmem:[#allocation8 + $0x214] ss:$12 sps:$4 sm:$0xff]   ;;  %v3082_v9 = vld [vmem:[#allocation8 + $0x2d8] ss:$12 sps:$4 sm:$0xff]  }
 0x178   :  { %1443 = vmatpush1.bf16.msra.mxu0 %v3003_v10  ;;  %2215 = vmatpush1.bf16.msra.mxu1 %v3006_v12  ;;  %v3079_v10 = vld [vmem:[#allocation8 + $0x210] ss:$12 sps:$4 sm:$0xff]   ;;  %v3083_v12 = vld [vmem:[#allocation8 + $0x218] ss:$12 sps:$4 sm:$0xff]  }
 0x179   :  { %2216 = vmatprep.subr.bf16.mxu1 %v3011_v14  ;;  %2788 = vmatprep.subr.bf16.mxu0 %v3012_v15  ;;  %v3086_v14 = vld [vmem:[#allocation8 + $0x22c] ss:$12 sps:$4 sm:$0xff]   ;;  %v3087_v15 = vld [vmem:[#allocation8 + $0x2f0] ss:$12 sps:$4 sm:$0xff]  }
 0x17b   :  { %1445 = vmatmul.mubr.bf16.vlgmr.msra.gmra.mrb[8].mxu0 %v3352_v37  ;;  %v3024_v37 = vld [vmem:[#allocation8 + $0x108] ss:$12 sps:$4 sm:$0xff]  }
 0x17c   :  { %2217 = vmatpush1.bf16.msra.mxu1 %v3009_v16  ;;  %2789 = vmatpush3.bf16.msra.mxu0 %v3013_v17  ;;  %v3084_v16 = vld [vmem:[#allocation8 + $0x228] ss:$12 sps:$4 sm:$0xff]   ;;  %v3088_v17 = vld [vmem:[#allocation8 + $0x230] ss:$12 sps:$4 sm:$0xff]  }
 0x17d   :  { %2218 = vmatprep.subr.bf16.mxu1 %v3016_v18  ;;  %2790 = vmatprep.subr.bf16.mxu0 %v3017_v58  ;;  %v3091_v18 = vld [vmem:[#allocation8 + $0x244] ss:$12 sps:$4 sm:$0xff]   ;;  %v3089_v58 = vld [vmem:[#allocation8 + $0x240] ss:$12 sps:$4 sm:$0xff]  }
 0x17e   :  { %2318 = vmatprep.mubr.bf16.mxu0 %v3364_v32  ;;  %v3034_v32 = vld [vmem:[#allocation8 + $0x138] ss:$12 sps:$4 sm:$0xff]  }
 0x180   :  { %2219 = vmatpush1.bf16.msra.mxu1 %v3014_v19  ;;  %2791 = vmatpush3.bf16.msra.mxu0 %v3018_v20  ;;  %v3094_v19 = vld [vmem:[#allocation8 + $0x25c] ss:$12 sps:$4 sm:$0xff]   ;;  %v3092_v20 = vld [vmem:[#allocation8 + $0x258] ss:$12 sps:$4 sm:$0xff]  }
 0x181   :  { %2220 = vmatprep.subr.bf16.mxu1 %v3021_v21  ;;  %2792 = vmatprep.subr.bf16.mxu0 %v3022_v22  ;;  %v3097_v21 = vld [vmem:[#allocation8 + $0x274] ss:$12 sps:$4 sm:$0xff]   ;;  %v3095_v22 = vld [vmem:[#allocation8 + $0x270] ss:$12 sps:$4 sm:$0xff]  }
 0x184   :  { %2221 = vmatpush1.bf16.msra.mxu1 %v3019_v23  ;;  %2793 = vmatpush3.bf16.msra.mxu0 %v3023_v24  ;;  %v3100_v23 = vld [vmem:[#allocation8 + $0x28c] ss:$12 sps:$4 sm:$0xff]   ;;  %v3098_v24 = vld [vmem:[#allocation8 + $0x288] ss:$12 sps:$4 sm:$0xff]  }
 0x185   :  { %2222 = vmatprep.subr.bf16.mxu1 %v3026_v25  ;;  %2794 = vmatprep.subr.bf16.mxu0 %v3027_v26  ;;  %v3103_v25 = vld [vmem:[#allocation8 + $0x2a4] ss:$12 sps:$4 sm:$0xff]   ;;  %v3101_v26 = vld [vmem:[#allocation8 + $0x2a0] ss:$12 sps:$4 sm:$0xff]  }
 0x188   :  { %2223 = vmatpush1.bf16.msra.mxu1 %v3024_v37  ;;  %2795 = vmatpush3.bf16.msra.mxu0 %v3028_v27  ;;  %v3106_v37 = vld [vmem:[#allocation8 + $0x2bc] ss:$12 sps:$4 sm:$0xff]   ;;  %v3104_v27 = vld [vmem:[#allocation8 + $0x2b8] ss:$12 sps:$4 sm:$0xff]  }
 0x189   :  { %2224 = vmatprep.subr.bf16.mxu1 %v3031_v28  ;;  %2796 = vmatprep.subr.bf16.mxu0 %v3032_v29  ;;  %v3109_v28 = vld [vmem:[#allocation8 + $0x2d4] ss:$12 sps:$4 sm:$0xff]   ;;  %v3107_v29 = vld [vmem:[#allocation8 + $0x2d0] ss:$12 sps:$4 sm:$0xff]  }
 0x18c   :  { %2225 = vmatpush1.bf16.msra.mxu1 %v3029_v13  ;;  %2797 = vmatpush3.bf16.msra.mxu0 %v3033_v30  ;;  %v3112_v13 = vld [vmem:[#allocation8 + $0x2ec] ss:$12 sps:$4 sm:$0xff]   ;;  %v3110_v30 = vld [vmem:[#allocation8 + $0x2e8] ss:$12 sps:$4 sm:$0xff]  }
 0x18d   :  { %2226 = vmatprep.subr.bf16.mxu1 %v3036_v60  ;;  %2798 = vmatprep.subr.bf16.mxu0 %v3037_v31 }
 0x190   :  { %2227 = vmatpush1.bf16.msra.mxu1 %v3034_v32  ;;  %2799 = vmatpush3.bf16.msra.mxu0 %v3038_v33 }
 0x191   :  { %2228 = vmatprep.subr.bf16.mxu1 %v3041_v34  ;;  %2800 = vmatprep.subr.bf16.mxu0 %v3042_v35 }
 0x194   :  { %2229 = vmatpush1.bf16.msra.mxu1 %v3039_v36  ;;  %2801 = vmatpush3.bf16.msra.mxu0 %v3043_v38  ;;  %v840_v36 = vld [vmem:[%s3420_s4] sm:$0x7] }
 0x195   :  { %2230 = vmatprep.subr.bf16.mxu1 %v3046_v39  ;;  %2802 = vmatprep.subr.bf16.mxu0 %v3047_v40  ;;  %v853_v38 = vrot.slane %v840_v36, %v3346_v0 }
 0x198   :  { %2231 = vmatpush1.bf16.msra.mxu1 %v3044_v41  ;;  %2803 = vmatpush3.bf16.msra.mxu0 %v3048_v42 }
 0x199   :  { %2243 = vmatprep.subr.bf16.mxu1 %v3051_v43  ;;  %2810 = vmatprep.subr.bf16.mxu0 %v3052_v44 }
 0x19b   :  { %2233 = vmatmul.mubr.bf16.vlgmr.msra.gmra.mrb[16].mxu1 %v3362_v11  ;;  %2319 = vmatmul.mubr.bf16.vlgmr.msra.gmra.mrb[12].mxu0 %v3362_v11  ;;  %v3067_v11 = vld [vmem:[#allocation8 + $0x290] ss:$12 sps:$4 sm:$0xff]  }
 0x19c   :  { %2244 = vmatpush1.bf16.msra.mxu1 %v3049_v46  ;;  %2811 = vmatpush3.bf16.msra.mxu0 %v3053_v47 }
 0x19d   :  { %2245 = vmatprep.subr.bf16.mxu1 %v3056_v2  ;;  %2812 = vmatprep.subr.bf16.mxu0 %v3057_v49  ;;  %v845_v49 = vrot.slane %v840_v36, %v3331_v59 }
 0x19e   :  { %2359 = vmatprep.mubr.bf16.mxu0 %v3369_v48  ;;  %2275 = vmatprep.mubr.bf16.mxu1 %v3369_v48  ;;  %v3073_v48 = vld [vmem:[#allocation8 + $0x1e8] ss:$12 sps:$4 sm:$0xff]  }
 0x1a0   :  { %2246 = vmatpush1.bf16.msra.mxu1 %v3054_v50  ;;  %2813 = vmatpush3.bf16.msra.mxu0 %v3058_v51  ;;  %v849_v50 = vrot.slane %v840_v36, %v3339_v61 }
 0x1a1   :  { %2247 = vmatprep.subr.bf16.mxu1 %v3061_v52  ;;  %2814 = vmatprep.subr.bf16.mxu0 %v3062_v53  ;;  %v2374_v52 = vld [vmem:[%s3423_s7] sm:$0x7] }
 0x1a4   :  { %2248 = vmatpush1.bf16.msra.mxu1 %v3059_v54  ;;  %2815 = vmatpush3.bf16.msra.mxu0 %v3063_v55  ;;  %v2379_v54 = vrot.slane %v2374_v52, %v3331_v59 }
 0x1a5   :  { %2249 = vmatprep.subr.bf16.mxu1 %v3066_v56  ;;  %2816 = vmatprep.subr.bf16.mxu0 %v3067_v11  ;;  %v2383_v11 = vrot.slane %v2374_v52, %v3339_v61 }
 0x1a8   :  { %2250 = vmatpush1.bf16.msra.mxu1 %v3064_v57  ;;  %2817 = vmatpush3.bf16.msra.mxu0 %v3068_v62 }
 0x1a9   :  { %2251 = vmatprep.subr.bf16.mxu1 %v3071_v63  ;;  %2818 = vmatprep.subr.bf16.mxu0 %v3072_v1 }
 0x1ac   :  { %2252 = vmatpush1.bf16.msra.mxu1 %v3069_v3  ;;  %2819 = vmatpush3.bf16.msra.mxu0 %v3073_v48 }
 0x1ad   :  { %2253 = vmatprep.subr.bf16.mxu1 %v3076_v4  ;;  %2820 = vmatprep.subr.bf16.mxu0 %v3077_v5  ;;  %v2387_v5 = vrot.slane %v2374_v52, %v3346_v0 }
 0x1b0   :  { %2254 = vmatpush1.bf16.msra.mxu1 %v3074_v6  ;;  %2821 = vmatpush3.bf16.msra.mxu0 %v3078_v7 }
 0x1b1   :  { %2255 = vmatprep.subr.bf16.mxu1 %v3081_v8  ;;  %2822 = vmatprep.subr.bf16.mxu0 %v3082_v9 }
 0x1b4   :  { %2256 = vmatpush1.bf16.msra.mxu1 %v3079_v10  ;;  %2823 = vmatpush3.bf16.msra.mxu0 %v3083_v12 }
 0x1b5   :  { %2257 = vmatprep.subr.bf16.mxu1 %v3086_v14  ;;  %2824 = vmatprep.subr.bf16.mxu0 %v3087_v15 }
 0x1b8   :  { %2258 = vmatpush1.bf16.msra.mxu1 %v3084_v16  ;;  %2825 = vmatpush3.bf16.msra.mxu0 %v3088_v17 }
 0x1b9   :  { %2259 = vmatprep.subr.bf16.mxu1 %v3091_v18 }
 0x1bb   :  { %2360 = vmatmul.mubr.bf16.vlgmr.msra.gmra.mrb[16].mxu0 %v3367_v45 }
 0x1bc   :  { %2260 = vmatpush1.bf16.msra.mxu1 %v3089_v58 }
 0x1bd   :  { %2261 = vmatprep.subr.bf16.mxu1 %v3094_v19 }
 0x1c0   :  { %2262 = vmatpush1.bf16.msra.mxu1 %v3092_v20 }
 0x1c1   :  { %2263 = vmatprep.subr.bf16.mxu1 %v3097_v21 }
 0x1c4   :  { %2264 = vmatpush1.bf16.msra.mxu1 %v3095_v22 }
 0x1c5   :  { %2265 = vmatprep.subr.bf16.mxu1 %v3100_v23 }
 0x1c8   :  { %2266 = vmatpush1.bf16.msra.mxu1 %v3098_v24 }
 0x1c9   :  { %2267 = vmatprep.subr.bf16.mxu1 %v3103_v25 }
 0x1cc   :  { %2268 = vmatpush1.bf16.msra.mxu1 %v3101_v26  ;;  %v1671_v26 = vld [vmem:[%s3422_s6] sm:$0x7] }
 0x1cd   :  { %2269 = vmatprep.subr.bf16.mxu1 %v3106_v37  ;;  %v1684_v37 = vrot.slane %v1671_v26, %v3346_v0  ;;  %v1680_v36 = vrot.slane %v1671_v26, %v3339_v61 }
 0x1d0   :  { %2270 = vmatpush1.bf16.msra.mxu1 %v3104_v27 }
 0x1d1   :  { %2271 = vmatprep.subr.bf16.mxu1 %v3109_v28 }
 0x1d4   :  { %2272 = vmatpush1.bf16.msra.mxu1 %v3107_v29 }
 0x1d5   :  { %2273 = vmatprep.subr.bf16.mxu1 %v3112_v13 }
 0x1d8   :  { %2274 = vmatpush1.bf16.msra.mxu1 %v3110_v30 }
 0x1db   :  { %2276 = vmatmul.mubr.bf16.vlgmr.msra.gmra.mrb[16].mxu1 %v3367_v45 }
 0x20e   :  { %v2760_v60 = vpop.f32.mrb[8].mxu1 }
 0x20f   :  { %v2761_v31 = vpop.f32.mrb[9].mxu1 }
 0x210   :  { %v2762_v32 = vadd.f32 %v2761_v31, %v2760_v60  ;;  %v2763_v33 = vpop.f32.mrb[10].mxu1 }
 0x211   :  { %v2764_v34 = vpop.f32.mrb[11].mxu1 }
 0x212   :  { %v2765_v35 = vadd.f32 %v2764_v34, %v2763_v33  ;;  %v1490_v41 = vadd.f32 %v2762_v32, %v853_v38 }
 0x214   :  { %v1493_v46 = vadd.f32 %v2765_v35, %v853_v38  ;;  %v1676_v35 = vrot.slane %v1671_v26, %v3331_v59 }
 0x22e   :  { %v2782_v39 = vpop.f32.mrb[12].mxu1 }
 0x22f   :  { %v2783_v40 = vpop.f32.mrb[13].mxu1 }
 0x230   :  { %v2784_v42 = vadd.f32 %v2783_v40, %v2782_v39  ;;  %v2785_v43 = vpop.f32.mrb[14].mxu1  ;;  %v2414_v39 = vld [vmem:[%s3425_s9] sm:$0x7] }
 0x231   :  { %v2786_v44 = vpop.f32.mrb[15].mxu1  ;;  %v2427_v52 = vrot.slane %v2414_v39, %v3346_v0 }
 0x232   :  { %v1531_v45 = vadd.f32 %v2784_v42, %v1490_v41  ;;  %v2787_v47 = vadd.f32 %v2786_v44, %v2785_v43  ;;  %v2419_v41 = vrot.slane %v2414_v39, %v3331_v59  ;;  %v2423_v44 = vrot.slane %v2414_v39, %v3339_v61 }
 0x234   :  { %v1534_v2 = vadd.f32 %v2787_v47, %v1493_v46  ;;  %v1539_v3 = vmax.f32 %v1531_v45, 0.0 }
 0x236   :  { %v1542_v8 = vmax.f32 %v1534_v2, 0.0  ;;  %v2393_v15 = vmul.f32 %v2387_v5, %v1539_v3 }
 0x238   :  { %v2396_v18 = vmul.f32 %v2387_v5, %v1542_v8  ;;  %v2743_v8 = vld [vmem:[#allocation3] ss:$0 sm:$0xff] }
 0x24e   :  { %v1446_v51 = vpop.f32.mrb[8].mxu0 }
 0x24f   :  { %v2832_v53 = vadd.f32 %v1446_v51, %v845_v49  ;;  %v1448_v55 = vpop.f32.mrb[9].mxu0 }
 0x250   :  { %v2833_v56 = vadd.f32 %v1448_v55, %v849_v50  ;;  %v1450_v57 = vpop.f32.mrb[10].mxu0 }
 0x251   :  { %v1537_v62 = vmax.f32 %v2832_v53, 0.0  ;;  %v2834_v63 = vadd.f32 %v1450_v57, %v845_v49  ;;  %v1452_v1 = vpop.f32.mrb[11].mxu0 }
 0x252   :  { %v1538_v48 = vmax.f32 %v2833_v56, 0.0  ;;  %v2835_v4 = vadd.f32 %v1452_v1, %v849_v50 }
 0x253   :  { %v2391_v6 = vmul.f32 %v2379_v54, %v1537_v62  ;;  %v1540_v7 = vmax.f32 %v2834_v63, 0.0 }
 0x254   :  { %v2392_v9 = vmul.f32 %v2383_v11, %v1538_v48  ;;  %v1541_v10 = vmax.f32 %v2835_v4, 0.0  ;;  %v2742_v4 = vld [vmem:[#allocation2] ss:$0 sm:$0xff] }
 0x255   :  { %v2394_v12 = vmul.f32 %v2379_v54, %v1540_v7 }
 0x256   :  { %v2395_v14 = vmul.f32 %v2383_v11, %v1541_v10  ;;  %v2397_v16 = vadd.f32 %v2392_v9, %v2391_v6 }
 0x258   :  { %v2398_v17 = vadd.f32 %v2397_v16, %v2393_v15  ;;  %v2401_v58 = vadd.f32 %v2395_v14, %v2394_v12 }
 0x25a   :  { %2399 = vadd.xlane.f32.xlu1 %v2398_v17  ;;  %v2402_v19 = vadd.f32 %v2401_v58, %v2396_v18 }
 0x25e   :  { %2403 = vadd.xlane.f32.xlu1 %v2402_v19 }
 0x26e   :  { %v2804_v20 = vpop.f32.mrb[12].mxu0 }
 0x26f   :  { %v2805_v21 = vpop.f32.mrb[13].mxu0 }
 0x270   :  { %v2806_v22 = vadd.f32 %v2805_v21, %v2804_v20  ;;  %v2807_v23 = vpop.f32.mrb[14].mxu0 }
 0x271   :  { %v2808_v24 = vpop.f32.mrb[15].mxu0 }
 0x272   :  { %v2809_v25 = vadd.f32 %v2808_v24, %v2807_v23  ;;  %v2321_v29 = vadd.f32 %v2806_v22, %v1684_v37 }
 0x274   :  { %v2324_v31 = vadd.f32 %v2809_v25, %v1684_v37 }
 0x28e   :  { %v2826_v27 = vpop.f32.mrb[16].mxu0 }
 0x28f   :  { %v2827_v28 = vpop.f32.mrb[17].mxu0 }
 0x290   :  { %v2828_v13 = vadd.f32 %v2827_v28, %v2826_v27  ;;  %v2829_v30 = vpop.f32.mrb[18].mxu0 }
 0x291   :  { %v2830_v60 = vpop.f32.mrb[19].mxu0 }
 0x292   :  { %v2362_v32 = vadd.f32 %v2828_v13, %v2321_v29  ;;  %v2831_v33 = vadd.f32 %v2830_v60, %v2829_v30 }
 0x294   :  { %v2365_v34 = vadd.f32 %v2831_v33, %v2324_v31  ;;  %v2370_v49 = vmax.f32 %v2362_v32, 0.0 }
 0x296   :  { %v2373_v55 = vmax.f32 %v2365_v34, 0.0  ;;  %v2433_v62 = vmul.f32 %v2427_v52, %v2370_v49 }
 0x298   :  { %v2436_v61 = vmul.f32 %v2427_v52, %v2373_v55 }
 0x2ae   :  { %v2277_v38 = vpop.f32.mrb[16].mxu1 }
 0x2af   :  { %v2836_v40 = vadd.f32 %v2277_v38, %v1676_v35  ;;  %v2279_v42 = vpop.f32.mrb[17].mxu1 }
 0x2b0   :  { %v2837_v43 = vadd.f32 %v2279_v42, %v1680_v36  ;;  %v2281_v46 = vpop.f32.mrb[18].mxu1 }
 0x2b1   :  { %v2368_v45 = vmax.f32 %v2836_v40, 0.0  ;;  %v2838_v47 = vadd.f32 %v2281_v46, %v1676_v35  ;;  %v2283_v2 = vpop.f32.mrb[19].mxu1 }
 0x2b2   :  { %v2369_v50 = vmax.f32 %v2837_v43, 0.0  ;;  %v2839_v51 = vadd.f32 %v2283_v2, %v1680_v36 }
 0x2b3   :  { %v2431_v53 = vmul.f32 %v2419_v41, %v2368_v45  ;;  %v2371_v54 = vmax.f32 %v2838_v47, 0.0 }
 0x2b4   :  { %v2432_v56 = vmul.f32 %v2423_v44, %v2369_v50  ;;  %v2372_v11 = vmax.f32 %v2839_v51, 0.0 }
 0x2b5   :  { %v2434_v57 = vmul.f32 %v2419_v41, %v2371_v54 }
 0x2b6   :  { %v2435_v59 = vmul.f32 %v2423_v44, %v2372_v11  ;;  %v2437_v63 = vadd.f32 %v2432_v56, %v2431_v53 }
 0x2b8   :  { %v2438_v1 = vadd.f32 %v2437_v63, %v2433_v62  ;;  %v2441_v3 = vadd.f32 %v2435_v59, %v2434_v57 }
 0x2ba   :  { %2439 = vadd.xlane.f32.xlu0 %v2438_v1  ;;  %v2442_v48 = vadd.f32 %v2441_v3, %v2436_v61 }
 0x2be   :  { %2443 = vadd.xlane.f32.xlu0 %v2442_v48 }
 0x2e7   :  { %v2400_v5 = vpop.xlane.xlu1 %2399 }
 0x2e8   :  { %v2412_v6 = vadd.f32 %v2742_v4, %v2400_v5 }
 0x2ea   :  { %2455 = vst.msk [vmem:[%s3426_s11] sm:$0xff] %vm2454_vm2, %v2412_v6 }
 0x2eb   :  { %v2404_v0 = vpop.xlane.xlu1 %2403 }
 0x2ec   :  { %v2413_v7 = vadd.f32 %v2742_v4, %v2404_v0 }
 0x2ee   :  { %2456 = vst.msk [vmem:[%s3426_s11 + $0x8] sm:$0xff] %vm2454_vm2, %v2413_v7 }
 0x347   :  { %v2440_v9 = vpop.xlane.xlu0 %2439 }
 0x348   :  { %v2452_v10 = vadd.f32 %v2743_v8, %v2440_v9 }
 0x34a   :  { %2459 = vrot.lane.b32.xlu0 %v2452_v10, %s3191_s27 }
 0x34b   :  { %v2444_v12 = vpop.xlane.xlu0 %2443 }
 0x34c   :  { %v2453_v14 = vadd.f32 %v2743_v8, %v2444_v12 }
 0x34e   :  { %2461 = vrot.lane.b32.xlu1 %v2453_v14, %s3191_s27 }
 0x3bc   :  { %v2460_v15 = vpop.permute.xlu0 %2459 }
 0x3bd   :  { %2466 = vst.msk [vmem:[%s3426_s11] sm:$0xff] %vm2465_vm3, %v2460_v15 }
 0x3c0   :  { %v2462_v16 = vpop.permute.xlu1 %2461 }
 0x3c1   :  { %2467 = vst.msk [vmem:[%s3426_s11 + $0x8] sm:$0xff] %vm2465_vm3, %v2462_v16 }
 0x3c2   :  { %2472 = vsyncpa [#allocation5], 1 }
 0x3c3   :  { %2473 = vsyncpa [#allocation7], 1 }

</bundles_post_ra>
